<compile_context>
chip_gen: v5e
topology: v5e:2x2
jax: 0.10.0
libtpu: 0.0.40
codegen_flags: <defaults>
</compile_context>

<pallas_src>
import math
import functools

import jax
import jax.numpy as jnp
from jax.experimental import pallas as pl
from jax.experimental.pallas import tpu as pltpu


def _mha_ln_kernel(q_ref, k_ref, v_ref, mask_ref,
                   wq_ref, wk_ref, wv_ref, wo_ref,
                   bq_ref, bk_ref, bv_ref, bo_ref,
                   ln_w_ref, ln_b_ref,
                   o_ref,
                   attn_ref,
                   *, num_heads: int, eps: float):
    """Processes Bb batch elements per grid step.

    q_ref             : (Bb, Sq, E)  f32 queries
    k_ref / v_ref     : (Bb, Sk, E)  f32 keys / values
    mask_ref          : (Bb, 1, Sk)  f32 additive key mask (0 or -1e30)
    wq/wk/wv/wo_ref   : (E, E)       bf16 pre-transposed weights (x @ W form)
    bq/bk/bv/bo_ref   : (1, E)       f32 biases
    ln_w_ref/ln_b_ref : (1, E)       f32 LayerNorm gamma / beta
    o_ref             : (Bb, Sq, E)  f32 output
    attn_ref          : (Bb*Sq, E)   f32 VMEM scratch (concatenated head outs)
    """
    Bb, Sq, E = q_ref.shape
    Sk = k_ref.shape[1]
    head_dim = E // num_heads
    scale = 1.0 / math.sqrt(head_dim)

    # Merge (batch, seq) -> rows so projection matmuls get a fat M dimension.
    # (Layout-free leading-dim reshape: minor dim unchanged.)
    q2d = q_ref[...].reshape(Bb * Sq, E)
    k2d = k_ref[...].reshape(Bb * Sk, E)
    v2d = v_ref[...].reshape(Bb * Sk, E)

    # Input projections: bf16 MXU operands, f32 accumulation, f32 bias add.
    # PyTorch scales q after the in-projection; do the same (in f32).
    qp = (jnp.dot(q2d.astype(jnp.bfloat16), wq_ref[...],
                  preferred_element_type=jnp.float32) + bq_ref[...]) * scale
    kp = jnp.dot(k2d.astype(jnp.bfloat16), wk_ref[...],
                 preferred_element_type=jnp.float32) + bk_ref[...]
    vp = jnp.dot(v2d.astype(jnp.bfloat16), wv_ref[...],
                 preferred_element_type=jnp.float32) + bv_ref[...]

    qp3 = qp.reshape(Bb, Sq, E)
    kp3 = kp.reshape(Bb, Sk, E)
    vp3 = vp.reshape(Bb, Sk, E)

    mask_row = mask_ref[...]                 # (Bb, 1, Sk), broadcast-added below

    # Per-head attention, batched over the Bb batch rows.  Head outputs are
    # written into a (Bb*Sq, E) scratch so the output projection is a single
    # full-K matmul instead of H tiny-K matmuls.
    for h in range(num_heads):
        lo = h * head_dim
        hi = lo + head_dim
        qh = qp3[:, :, lo:hi].astype(jnp.bfloat16)   # (Bb, Sq, Dh)
        kh = kp3[:, :, lo:hi].astype(jnp.bfloat16)   # (Bb, Sk, Dh)
        vh = vp3[:, :, lo:hi].astype(jnp.bfloat16)   # (Bb, Sk, Dh)

        s = jnp.einsum('bqd,bkd->bqk', qh, kh,
                       preferred_element_type=jnp.float32) + mask_row
        m = jnp.max(s, axis=-1, keepdims=True)
        p = jnp.exp(s - m)                                    # f32
        denom = jnp.sum(p, axis=-1, keepdims=True)            # (Bb, Sq, 1)

        o_h = jnp.einsum('bqk,bkd->bqd', p.astype(jnp.bfloat16), vh,
                         preferred_element_type=jnp.float32)
        # Deferred softmax normalization, exact reciprocal (correctness).
        o_h = o_h * pl.reciprocal(denom, approx=False)

        attn_ref[:, lo:hi] = o_h.reshape(Bb * Sq, head_dim)

    # Single fat output projection over all heads: (Bb*Sq, E) @ (E, E).
    proj = jnp.dot(attn_ref[...].astype(jnp.bfloat16), wo_ref[...],
                   preferred_element_type=jnp.float32) + bo_ref[...]

    # Dropout = identity (eval/inference semantics).
    x = q2d + proj

    # Centered two-pass LayerNorm statistics (f32).
    mean = jnp.mean(x, axis=-1, keepdims=True)
    xc = x - mean
    var = jnp.mean(xc * xc, axis=-1, keepdims=True)
    y = xc * jax.lax.rsqrt(var + eps)
    y = y * ln_w_ref[...] + ln_b_ref[...]

    o_ref[...] = y.reshape(Bb, Sq, E).astype(o_ref.dtype)


def _estimate_step_vmem_bytes(bb, Sq, Sk, E):
    """Rough per-grid-step VMEM footprint (double-buffered blocks + params +
    live intermediates)."""
    f32, bf16 = 4, 2
    io = 2 * ((bb * Sq * E) * f32          # query block
              + 2 * (bb * Sk * E) * f32    # key + value blocks
              + (bb * Sk) * f32            # additive-mask block
              + (bb * Sq * E) * f32)       # output block
    params = 2 * (4 * E * E * bf16 + 6 * E * f32)
    inter = ((bb * Sq * E + 2 * bb * Sk * E) * f32   # qp / kp / vp
             + 2 * (bb * Sq * Sk) * f32              # per-head s and p
             + (bb * Sq * E) * f32                   # attn scratch
             + 2 * (bb * Sq * E) * f32)              # residual x and y
    return io + params + inter


def _pick_batch_block(B, Sq, Sk, E, *, target_rows=512,
                      vmem_budget_bytes=44 * 1024 * 1024):
    """Largest divisor of B such that (a) Bb*Sq ~ target_rows MXU rows,
    (b) the per-step footprint fits the VMEM budget, and (c) the grid keeps
    >= 2 steps when B >= 2 so v7x megacore can use both TensorCores."""
    bb = min(B, max(1, target_rows // max(Sq, 1)))
    if B >= 2:
        bb = min(bb, max(1, B // 2))          # keep at least 2 grid steps
    while bb > 1 and (B % bb != 0
                      or _estimate_step_vmem_bytes(bb, Sq, Sk, E)
                      > vmem_budget_bytes):
        bb -= 1
    return max(bb, 1)


def mha_attention_forward(query, key, value, params,
                          key_padding_mask=None, num_heads=4, eps=1e-5):
    """query/key/value: (B, S, E) float32.  key_padding_mask: (B, Sk) bool
    (True = masked / padding), same convention as PyTorch."""
    B, Sq, E = query.shape
    Sk = key.shape[1]
    assert E % num_heads == 0, "embed_dim must be divisible by num_heads"

    # Large finite negative instead of -inf: fully-masked rows stay finite
    # (intentionally diverges from PyTorch's NaN on fully-masked rows).
    if key_padding_mask is None:
        mask_add = jnp.zeros((B, 1, Sk), jnp.float32)
    else:
        mask_add = jnp.where(key_padding_mask, -1e30, 0.0
                             ).astype(jnp.float32).reshape(B, 1, Sk)

    # Host-side weight prep: pre-transpose, pre-split, and pre-cast MXU
    # operands to bf16 (halves weight DMA/VMEM; accumulation stays f32 in the
    # kernel).  Biases / LayerNorm params stay f32 (VPU adds in f32).
    in_w_t = params["in_proj_weight"].T.astype(jnp.float32)     # (E, 3E)
    wq_t = in_w_t[:, 0 * E:1 * E].astype(jnp.bfloat16)
    wk_t = in_w_t[:, 1 * E:2 * E].astype(jnp.bfloat16)
    wv_t = in_w_t[:, 2 * E:3 * E].astype(jnp.bfloat16)
    wo_t = params["out_proj_weight"].T.astype(jnp.bfloat16)     # (E, E)
    in_b = params["in_proj_bias"].astype(jnp.float32)
    bq = in_b[0 * E:1 * E].reshape(1, E)
    bk = in_b[1 * E:2 * E].reshape(1, E)
    bv = in_b[2 * E:3 * E].reshape(1, E)
    bo = params["out_proj_bias"].astype(jnp.float32).reshape(1, E)
    ln_w = params["ln_weight"].astype(jnp.float32).reshape(1, E)
    ln_b = params["ln_bias"].astype(jnp.float32).reshape(1, E)

    Bb = _pick_batch_block(B, Sq, Sk, E)
    grid = (B // Bb,)

    kernel = functools.partial(_mha_ln_kernel, num_heads=num_heads, eps=eps)
    rep = lambda shape: pl.BlockSpec(shape, lambda b: (0,) * len(shape))

    return pl.pallas_call(
        kernel,
        out_shape=jax.ShapeDtypeStruct((B, Sq, E), jnp.float32),
        grid_spec=pltpu.PrefetchScalarGridSpec(
            num_scalar_prefetch=0,
            grid=grid,
            in_specs=[
                pl.BlockSpec((Bb, Sq, E), lambda b: (b, 0, 0)),   # query
                pl.BlockSpec((Bb, Sk, E), lambda b: (b, 0, 0)),   # key
                pl.BlockSpec((Bb, Sk, E), lambda b: (b, 0, 0)),   # value
                pl.BlockSpec((Bb, 1, Sk), lambda b: (b, 0, 0)),   # additive mask
                rep((E, E)), rep((E, E)), rep((E, E)), rep((E, E)),  # Wq Wk Wv Wo (bf16, pre-T)
                rep((1, E)), rep((1, E)), rep((1, E)), rep((1, E)),  # bq bk bv bo
                rep((1, E)), rep((1, E)),                            # ln gamma / beta
            ],
            out_specs=pl.BlockSpec((Bb, Sq, E), lambda b: (b, 0, 0)),
            scratch_shapes=[pltpu.VMEM((Bb * Sq, E), jnp.float32)],
        ),
        compiler_params=pltpu.CompilerParams(
            dimension_semantics=("parallel",),
            vmem_limit_bytes=64 * 1024 * 1024),
    )(query, key, value, mask_add,
      wq_t, wk_t, wv_t, wo_t, bq, bk, bv, bo, ln_w, ln_b)


def init_params(key, embed_dim):
    """Deterministic synthetic parameters (shapes match nn.MultiheadAttention
    + nn.LayerNorm)."""
    k1, k2, k3, k4 = jax.random.split(key, 4)
    E = embed_dim
    scale = 1.0 / math.sqrt(E)
    return {
        "in_proj_weight": jax.random.uniform(k1, (3 * E, E), jnp.float32,
                                             -scale, scale),
        "in_proj_bias": jax.random.uniform(k3, (3 * E,), jnp.float32,
                                           -scale, scale),
        "out_proj_weight": jax.random.uniform(k2, (E, E), jnp.float32,
                                              -scale, scale),
        "out_proj_bias": jax.random.uniform(k4, (E,), jnp.float32,
                                            -scale, scale),
        "ln_weight": jnp.ones((E,), jnp.float32),
        "ln_bias": jnp.zeros((E,), jnp.float32),
    }


if __name__ == "__main__":
    B, S, E, H = 4, 8, 32, 4

    root = jax.random.PRNGKey(0)
    kq, kk, kv, kp = jax.random.split(root, 4)

    query = jax.random.normal(kq, (B, S, E), jnp.float32)
    key = jax.random.normal(kk, (B, S, E), jnp.float32)
    value = jax.random.normal(kv, (B, S, E), jnp.float32)

    # key_padding_mask: True = padding (masked)
    key_padding_mask = (jnp.zeros((B, S), bool)
                        .at[1, -2:].set(True)
                        .at[3, -3:].set(True))

    params = init_params(kp, E)

    out = mha_attention_forward(query, key, value, params,
                                key_padding_mask=key_padding_mask,
                                num_heads=H)
    out = jax.block_until_ready(out)
    assert out.shape == (B, S, E)
    assert bool(jnp.all(jnp.isfinite(out)))
    print("KERNEL_OK")
</pallas_src>

<mosaic_0001>
module attributes {stable_mosaic.version = 11 : i64} {
  func.func @_mha_ln_kernel(%arg0: i32, %arg1: memref<2x8x32xf32, #tpu.memory_space<vmem>>, %arg2: memref<2x8x32xf32, #tpu.memory_space<vmem>>, %arg3: memref<2x8x32xf32, #tpu.memory_space<vmem>>, %arg4: memref<2x1x8xf32, #tpu.memory_space<vmem>>, %arg5: memref<32x32xbf16, #tpu.memory_space<vmem>>, %arg6: memref<32x32xbf16, #tpu.memory_space<vmem>>, %arg7: memref<32x32xbf16, #tpu.memory_space<vmem>>, %arg8: memref<32x32xbf16, #tpu.memory_space<vmem>>, %arg9: memref<1x32xf32, #tpu.memory_space<vmem>>, %arg10: memref<1x32xf32, #tpu.memory_space<vmem>>, %arg11: memref<1x32xf32, #tpu.memory_space<vmem>>, %arg12: memref<1x32xf32, #tpu.memory_space<vmem>>, %arg13: memref<1x32xf32, #tpu.memory_space<vmem>>, %arg14: memref<1x32xf32, #tpu.memory_space<vmem>>, %arg15: memref<2x8x32xf32, #tpu.memory_space<vmem>>, %arg16: memref<16x32xf32, #tpu.memory_space<vmem>>) attributes {dimension_semantics = [#tpu.dimension_semantics<parallel>], iteration_bounds = array<i64: 2>, scalar_prefetch = 0 : i64, scratch_operands = 1 : i64, tpu.core_type = #tpu.core_type<tc>, window_params = [{transform_indices = @transform_0, window_bounds = array<i64: 2, 8, 32>}, {transform_indices = @transform_1, window_bounds = array<i64: 2, 8, 32>}, {transform_indices = @transform_2, window_bounds = array<i64: 2, 8, 32>}, {transform_indices = @transform_3, window_bounds = array<i64: 2, 1, 8>}, {pipeline_mode = #tpu.pipeline_mode<synchronous>, transform_indices = @transform_4, window_bounds = array<i64: 32, 32>}, {pipeline_mode = #tpu.pipeline_mode<synchronous>, transform_indices = @transform_5, window_bounds = array<i64: 32, 32>}, {pipeline_mode = #tpu.pipeline_mode<synchronous>, transform_indices = @transform_6, window_bounds = array<i64: 32, 32>}, {pipeline_mode = #tpu.pipeline_mode<synchronous>, transform_indices = @transform_7, window_bounds = array<i64: 32, 32>}, {pipeline_mode = #tpu.pipeline_mode<synchronous>, transform_indices = @transform_8, window_bounds = array<i64: 1, 32>}, {pipeline_mode = #tpu.pipeline_mode<synchronous>, transform_indices = @transform_9, window_bounds = array<i64: 1, 32>}, {pipeline_mode = #tpu.pipeline_mode<synchronous>, transform_indices = @transform_10, window_bounds = array<i64: 1, 32>}, {pipeline_mode = #tpu.pipeline_mode<synchronous>, transform_indices = @transform_11, window_bounds = array<i64: 1, 32>}, {pipeline_mode = #tpu.pipeline_mode<synchronous>, transform_indices = @transform_12, window_bounds = array<i64: 1, 32>}, {pipeline_mode = #tpu.pipeline_mode<synchronous>, transform_indices = @transform_13, window_bounds = array<i64: 1, 32>}, {transform_indices = @transform_14, window_bounds = array<i64: 2, 8, 32>}]} {
    %c0 = arith.constant 0 : index
    %c0_0 = arith.constant 0 : index
    %c0_1 = arith.constant 0 : index
    %0 = vector.load %arg1[%c0, %c0_0, %c0_1] : memref<2x8x32xf32, #tpu.memory_space<vmem>>, vector<2x8x32xf32>
    %1 = vector.shape_cast %0 : vector<2x8x32xf32> to vector<16x32xf32>
    %c0_2 = arith.constant 0 : index
    %c0_3 = arith.constant 0 : index
    %c0_4 = arith.constant 0 : index
    %2 = vector.load %arg2[%c0_2, %c0_3, %c0_4] : memref<2x8x32xf32, #tpu.memory_space<vmem>>, vector<2x8x32xf32>
    %3 = vector.shape_cast %2 : vector<2x8x32xf32> to vector<16x32xf32>
    %c0_5 = arith.constant 0 : index
    %c0_6 = arith.constant 0 : index
    %c0_7 = arith.constant 0 : index
    %4 = vector.load %arg3[%c0_5, %c0_6, %c0_7] : memref<2x8x32xf32, #tpu.memory_space<vmem>>, vector<2x8x32xf32>
    %5 = vector.shape_cast %4 : vector<2x8x32xf32> to vector<16x32xf32>
    %6 = arith.truncf %1 : vector<16x32xf32> to vector<16x32xbf16>
    %c0_8 = arith.constant 0 : index
    %c0_9 = arith.constant 0 : index
    %7 = vector.load %arg5[%c0_8, %c0_9] : memref<32x32xbf16, #tpu.memory_space<vmem>>, vector<32x32xbf16>
    %cst = arith.constant dense<0.000000e+00> : vector<16x32xf32>
    %8 = tpu.matmul %6, %7, %cst {dimension_numbers = #tpu.dot_dimension_numbers<[1], [0], [0], [1], [0, 0, 1, 1], [], []>} : vector<16x32xbf16>, vector<32x32xbf16>, vector<16x32xf32> -> vector<16x32xf32>
    %c0_10 = arith.constant 0 : index
    %c0_11 = arith.constant 0 : index
    %9 = vector.load %arg9[%c0_10, %c0_11] : memref<1x32xf32, #tpu.memory_space<vmem>>, vector<1x32xf32>
    %10 = vector.broadcast %9 : vector<1x32xf32> to vector<16x32xf32>
    %11 = arith.addf %8, %10 : vector<16x32xf32>
    %cst_12 = arith.constant 0.353553385 : f32
    %12 = vector.broadcast %cst_12 : f32 to vector<16x32xf32>
    %13 = arith.mulf %11, %12 : vector<16x32xf32>
    %14 = arith.truncf %3 : vector<16x32xf32> to vector<16x32xbf16>
    %c0_13 = arith.constant 0 : index
    %c0_14 = arith.constant 0 : index
    %15 = vector.load %arg6[%c0_13, %c0_14] : memref<32x32xbf16, #tpu.memory_space<vmem>>, vector<32x32xbf16>
    %cst_15 = arith.constant dense<0.000000e+00> : vector<16x32xf32>
    %16 = tpu.matmul %14, %15, %cst_15 {dimension_numbers = #tpu.dot_dimension_numbers<[1], [0], [0], [1], [0, 0, 1, 1], [], []>} : vector<16x32xbf16>, vector<32x32xbf16>, vector<16x32xf32> -> vector<16x32xf32>
    %c0_16 = arith.constant 0 : index
    %c0_17 = arith.constant 0 : index
    %17 = vector.load %arg10[%c0_16, %c0_17] : memref<1x32xf32, #tpu.memory_space<vmem>>, vector<1x32xf32>
    %18 = vector.broadcast %17 : vector<1x32xf32> to vector<16x32xf32>
    %19 = arith.addf %16, %18 : vector<16x32xf32>
    %20 = arith.truncf %5 : vector<16x32xf32> to vector<16x32xbf16>
    %c0_18 = arith.constant 0 : index
    %c0_19 = arith.constant 0 : index
    %21 = vector.load %arg7[%c0_18, %c0_19] : memref<32x32xbf16, #tpu.memory_space<vmem>>, vector<32x32xbf16>
    %cst_20 = arith.constant dense<0.000000e+00> : vector<16x32xf32>
    %22 = tpu.matmul %20, %21, %cst_20 {dimension_numbers = #tpu.dot_dimension_numbers<[1], [0], [0], [1], [0, 0, 1, 1], [], []>} : vector<16x32xbf16>, vector<32x32xbf16>, vector<16x32xf32> -> vector<16x32xf32>
    %c0_21 = arith.constant 0 : index
    %c0_22 = arith.constant 0 : index
    %23 = vector.load %arg11[%c0_21, %c0_22] : memref<1x32xf32, #tpu.memory_space<vmem>>, vector<1x32xf32>
    %24 = vector.broadcast %23 : vector<1x32xf32> to vector<16x32xf32>
    %25 = arith.addf %22, %24 : vector<16x32xf32>
    %26 = vector.shape_cast %13 : vector<16x32xf32> to vector<2x8x32xf32>
    %27 = vector.shape_cast %19 : vector<16x32xf32> to vector<2x8x32xf32>
    %28 = vector.shape_cast %25 : vector<16x32xf32> to vector<2x8x32xf32>
    %c0_23 = arith.constant 0 : index
    %c0_24 = arith.constant 0 : index
    %c0_25 = arith.constant 0 : index
    %29 = vector.load %arg4[%c0_23, %c0_24, %c0_25] : memref<2x1x8xf32, #tpu.memory_space<vmem>>, vector<2x1x8xf32>
    %30 = vector.extract_strided_slice %26 {offsets = [0, 0, 0], sizes = [2, 8, 8], strides = [1, 1, 1]} : vector<2x8x32xf32> to vector<2x8x8xf32>
    %31 = arith.truncf %30 : vector<2x8x8xf32> to vector<2x8x8xbf16>
    %32 = vector.extract_strided_slice %27 {offsets = [0, 0, 0], sizes = [2, 8, 8], strides = [1, 1, 1]} : vector<2x8x32xf32> to vector<2x8x8xf32>
    %33 = arith.truncf %32 : vector<2x8x8xf32> to vector<2x8x8xbf16>
    %34 = vector.extract_strided_slice %28 {offsets = [0, 0, 0], sizes = [2, 8, 8], strides = [1, 1, 1]} : vector<2x8x32xf32> to vector<2x8x8xf32>
    %35 = arith.truncf %34 : vector<2x8x8xf32> to vector<2x8x8xbf16>
    "tpu.trace_start"() <{level = 10 : i32, message = "bqd,bkd->bqk"}> : () -> ()
    %cst_26 = arith.constant dense<0.000000e+00> : vector<2x8x8xf32>
    %36 = tpu.matmul %31, %33, %cst_26 {dimension_numbers = #tpu.dot_dimension_numbers<[2], [2], [1], [1], [0, 0, 0, 1, 1, 1], [0], [0]>} : vector<2x8x8xbf16>, vector<2x8x8xbf16>, vector<2x8x8xf32> -> vector<2x8x8xf32>
    "tpu.trace_stop"() : () -> ()
    %37 = vector.broadcast %29 : vector<2x1x8xf32> to vector<2x8x8xf32>
    %38 = arith.addf %36, %37 : vector<2x8x8xf32>
    %cst_27 = arith.constant dense<0xFF800000> : vector<2x8xf32>
    %39 = vector.multi_reduction <maximumf>, %38, %cst_27 [2] : vector<2x8x8xf32> to vector<2x8xf32>
    %40 = vector.shape_cast %39 : vector<2x8xf32> to vector<2x8x1xf32>
    %41 = vector.broadcast %40 : vector<2x8x1xf32> to vector<2x8x8xf32>
    %42 = arith.subf %38, %41 : vector<2x8x8xf32>
    %43 = math.exp %42 : vector<2x8x8xf32>
    %cst_28 = arith.constant dense<0.000000e+00> : vector<2x8xf32>
    %44 = vector.multi_reduction <add>, %43, %cst_28 [2] : vector<2x8x8xf32> to vector<2x8xf32>
    %45 = vector.shape_cast %44 : vector<2x8xf32> to vector<2x8x1xf32>
    %46 = arith.truncf %43 : vector<2x8x8xf32> to vector<2x8x8xbf16>
    "tpu.trace_start"() <{level = 10 : i32, message = "bqk,bkd->bqd"}> : () -> ()
    %cst_29 = arith.constant dense<0.000000e+00> : vector<2x8x8xf32>
    %47 = tpu.matmul %46, %35, %cst_29 {dimension_numbers = #tpu.dot_dimension_numbers<[2], [1], [1], [2], [0, 0, 0, 1, 1, 2], [0], [0]>} : vector<2x8x8xbf16>, vector<2x8x8xbf16>, vector<2x8x8xf32> -> vector<2x8x8xf32>
    "tpu.trace_stop"() : () -> ()
    %48 = tpu.reciprocal %45 : vector<2x8x1xf32> -> vector<2x8x1xf32>
    %49 = vector.broadcast %48 : vector<2x8x1xf32> to vector<2x8x8xf32>
    %50 = arith.mulf %47, %49 : vector<2x8x8xf32>
    %51 = vector.shape_cast %50 : vector<2x8x8xf32> to vector<16x8xf32>
    %c0_30 = arith.constant 0 : index
    %c0_31 = arith.constant 0 : index
    %52 = vector.load %arg16[%c0_30, %c0_31] : memref<16x32xf32, #tpu.memory_space<vmem>>, vector<16x8xf32>
    tpu.vector_store %arg16[%c0_30, %c0_31], %51 {strides = array<i32>} : memref<16x32xf32, #tpu.memory_space<vmem>>, vector<16x8xf32>,
    %53 = vector.extract_strided_slice %26 {offsets = [0, 0, 8], sizes = [2, 8, 8], strides = [1, 1, 1]} : vector<2x8x32xf32> to vector<2x8x8xf32>
    %54 = arith.truncf %53 : vector<2x8x8xf32> to vector<2x8x8xbf16>
    %55 = vector.extract_strided_slice %27 {offsets = [0, 0, 8], sizes = [2, 8, 8], strides = [1, 1, 1]} : vector<2x8x32xf32> to vector<2x8x8xf32>
    %56 = arith.truncf %55 : vector<2x8x8xf32> to vector<2x8x8xbf16>
    %57 = vector.extract_strided_slice %28 {offsets = [0, 0, 8], sizes = [2, 8, 8], strides = [1, 1, 1]} : vector<2x8x32xf32> to vector<2x8x8xf32>
    %58 = arith.truncf %57 : vector<2x8x8xf32> to vector<2x8x8xbf16>
    "tpu.trace_start"() <{level = 10 : i32, message = "bqd,bkd->bqk"}> : () -> ()
    %cst_32 = arith.constant dense<0.000000e+00> : vector<2x8x8xf32>
    %59 = tpu.matmul %54, %56, %cst_32 {dimension_numbers = #tpu.dot_dimension_numbers<[2], [2], [1], [1], [0, 0, 0, 1, 1, 1], [0], [0]>} : vector<2x8x8xbf16>, vector<2x8x8xbf16>, vector<2x8x8xf32> -> vector<2x8x8xf32>
    "tpu.trace_stop"() : () -> ()
    %60 = vector.broadcast %29 : vector<2x1x8xf32> to vector<2x8x8xf32>
    %61 = arith.addf %59, %60 : vector<2x8x8xf32>
    %cst_33 = arith.constant dense<0xFF800000> : vector<2x8xf32>
    %62 = vector.multi_reduction <maximumf>, %61, %cst_33 [2] : vector<2x8x8xf32> to vector<2x8xf32>
    %63 = vector.shape_cast %62 : vector<2x8xf32> to vector<2x8x1xf32>
    %64 = vector.broadcast %63 : vector<2x8x1xf32> to vector<2x8x8xf32>
    %65 = arith.subf %61, %64 : vector<2x8x8xf32>
    %66 = math.exp %65 : vector<2x8x8xf32>
    %cst_34 = arith.constant dense<0.000000e+00> : vector<2x8xf32>
    %67 = vector.multi_reduction <add>, %66, %cst_34 [2] : vector<2x8x8xf32> to vector<2x8xf32>
    %68 = vector.shape_cast %67 : vector<2x8xf32> to vector<2x8x1xf32>
    %69 = arith.truncf %66 : vector<2x8x8xf32> to vector<2x8x8xbf16>
    "tpu.trace_start"() <{level = 10 : i32, message = "bqk,bkd->bqd"}> : () -> ()
    %cst_35 = arith.constant dense<0.000000e+00> : vector<2x8x8xf32>
    %70 = tpu.matmul %69, %58, %cst_35 {dimension_numbers = #tpu.dot_dimension_numbers<[2], [1], [1], [2], [0, 0, 0, 1, 1, 2], [0], [0]>} : vector<2x8x8xbf16>, vector<2x8x8xbf16>, vector<2x8x8xf32> -> vector<2x8x8xf32>
    "tpu.trace_stop"() : () -> ()
    %71 = tpu.reciprocal %68 : vector<2x8x1xf32> -> vector<2x8x1xf32>
    %72 = vector.broadcast %71 : vector<2x8x1xf32> to vector<2x8x8xf32>
    %73 = arith.mulf %70, %72 : vector<2x8x8xf32>
    %74 = vector.shape_cast %73 : vector<2x8x8xf32> to vector<16x8xf32>
    %c0_36 = arith.constant 0 : index
    %c8 = arith.constant 8 : index
    %75 = vector.load %arg16[%c0_36, %c8] : memref<16x32xf32, #tpu.memory_space<vmem>>, vector<16x8xf32>
    tpu.vector_store %arg16[%c0_36, %c8], %74 {strides = array<i32>} : memref<16x32xf32, #tpu.memory_space<vmem>>, vector<16x8xf32>,
    %76 = vector.extract_strided_slice %26 {offsets = [0, 0, 16], sizes = [2, 8, 8], strides = [1, 1, 1]} : vector<2x8x32xf32> to vector<2x8x8xf32>
    %77 = arith.truncf %76 : vector<2x8x8xf32> to vector<2x8x8xbf16>
    %78 = vector.extract_strided_slice %27 {offsets = [0, 0, 16], sizes = [2, 8, 8], strides = [1, 1, 1]} : vector<2x8x32xf32> to vector<2x8x8xf32>
    %79 = arith.truncf %78 : vector<2x8x8xf32> to vector<2x8x8xbf16>
    %80 = vector.extract_strided_slice %28 {offsets = [0, 0, 16], sizes = [2, 8, 8], strides = [1, 1, 1]} : vector<2x8x32xf32> to vector<2x8x8xf32>
    %81 = arith.truncf %80 : vector<2x8x8xf32> to vector<2x8x8xbf16>
    "tpu.trace_start"() <{level = 10 : i32, message = "bqd,bkd->bqk"}> : () -> ()
    %cst_37 = arith.constant dense<0.000000e+00> : vector<2x8x8xf32>
    %82 = tpu.matmul %77, %79, %cst_37 {dimension_numbers = #tpu.dot_dimension_numbers<[2], [2], [1], [1], [0, 0, 0, 1, 1, 1], [0], [0]>} : vector<2x8x8xbf16>, vector<2x8x8xbf16>, vector<2x8x8xf32> -> vector<2x8x8xf32>
    "tpu.trace_stop"() : () -> ()
    %83 = vector.broadcast %29 : vector<2x1x8xf32> to vector<2x8x8xf32>
    %84 = arith.addf %82, %83 : vector<2x8x8xf32>
    %cst_38 = arith.constant dense<0xFF800000> : vector<2x8xf32>
    %85 = vector.multi_reduction <maximumf>, %84, %cst_38 [2] : vector<2x8x8xf32> to vector<2x8xf32>
    %86 = vector.shape_cast %85 : vector<2x8xf32> to vector<2x8x1xf32>
    %87 = vector.broadcast %86 : vector<2x8x1xf32> to vector<2x8x8xf32>
    %88 = arith.subf %84, %87 : vector<2x8x8xf32>
    %89 = math.exp %88 : vector<2x8x8xf32>
    %cst_39 = arith.constant dense<0.000000e+00> : vector<2x8xf32>
    %90 = vector.multi_reduction <add>, %89, %cst_39 [2] : vector<2x8x8xf32> to vector<2x8xf32>
    %91 = vector.shape_cast %90 : vector<2x8xf32> to vector<2x8x1xf32>
    %92 = arith.truncf %89 : vector<2x8x8xf32> to vector<2x8x8xbf16>
    "tpu.trace_start"() <{level = 10 : i32, message = "bqk,bkd->bqd"}> : () -> ()
    %cst_40 = arith.constant dense<0.000000e+00> : vector<2x8x8xf32>
    %93 = tpu.matmul %92, %81, %cst_40 {dimension_numbers = #tpu.dot_dimension_numbers<[2], [1], [1], [2], [0, 0, 0, 1, 1, 2], [0], [0]>} : vector<2x8x8xbf16>, vector<2x8x8xbf16>, vector<2x8x8xf32> -> vector<2x8x8xf32>
    "tpu.trace_stop"() : () -> ()
    %94 = tpu.reciprocal %91 : vector<2x8x1xf32> -> vector<2x8x1xf32>
    %95 = vector.broadcast %94 : vector<2x8x1xf32> to vector<2x8x8xf32>
    %96 = arith.mulf %93, %95 : vector<2x8x8xf32>
    %97 = vector.shape_cast %96 : vector<2x8x8xf32> to vector<16x8xf32>
    %c0_41 = arith.constant 0 : index
    %c16 = arith.constant 16 : index
    %98 = vector.load %arg16[%c0_41, %c16] : memref<16x32xf32, #tpu.memory_space<vmem>>, vector<16x8xf32>
    tpu.vector_store %arg16[%c0_41, %c16], %97 {strides = array<i32>} : memref<16x32xf32, #tpu.memory_space<vmem>>, vector<16x8xf32>,
    %99 = vector.extract_strided_slice %26 {offsets = [0, 0, 24], sizes = [2, 8, 8], strides = [1, 1, 1]} : vector<2x8x32xf32> to vector<2x8x8xf32>
    %100 = arith.truncf %99 : vector<2x8x8xf32> to vector<2x8x8xbf16>
    %101 = vector.extract_strided_slice %27 {offsets = [0, 0, 24], sizes = [2, 8, 8], strides = [1, 1, 1]} : vector<2x8x32xf32> to vector<2x8x8xf32>
    %102 = arith.truncf %101 : vector<2x8x8xf32> to vector<2x8x8xbf16>
    %103 = vector.extract_strided_slice %28 {offsets = [0, 0, 24], sizes = [2, 8, 8], strides = [1, 1, 1]} : vector<2x8x32xf32> to vector<2x8x8xf32>
    %104 = arith.truncf %103 : vector<2x8x8xf32> to vector<2x8x8xbf16>
    "tpu.trace_start"() <{level = 10 : i32, message = "bqd,bkd->bqk"}> : () -> ()
    %cst_42 = arith.constant dense<0.000000e+00> : vector<2x8x8xf32>
    %105 = tpu.matmul %100, %102, %cst_42 {dimension_numbers = #tpu.dot_dimension_numbers<[2], [2], [1], [1], [0, 0, 0, 1, 1, 1], [0], [0]>} : vector<2x8x8xbf16>, vector<2x8x8xbf16>, vector<2x8x8xf32> -> vector<2x8x8xf32>
    "tpu.trace_stop"() : () -> ()
    %106 = vector.broadcast %29 : vector<2x1x8xf32> to vector<2x8x8xf32>
    %107 = arith.addf %105, %106 : vector<2x8x8xf32>
    %cst_43 = arith.constant dense<0xFF800000> : vector<2x8xf32>
    %108 = vector.multi_reduction <maximumf>, %107, %cst_43 [2] : vector<2x8x8xf32> to vector<2x8xf32>
    %109 = vector.shape_cast %108 : vector<2x8xf32> to vector<2x8x1xf32>
    %110 = vector.broadcast %109 : vector<2x8x1xf32> to vector<2x8x8xf32>
    %111 = arith.subf %107, %110 : vector<2x8x8xf32>
    %112 = math.exp %111 : vector<2x8x8xf32>
    %cst_44 = arith.constant dense<0.000000e+00> : vector<2x8xf32>
    %113 = vector.multi_reduction <add>, %112, %cst_44 [2] : vector<2x8x8xf32> to vector<2x8xf32>
    %114 = vector.shape_cast %113 : vector<2x8xf32> to vector<2x8x1xf32>
    %115 = arith.truncf %112 : vector<2x8x8xf32> to vector<2x8x8xbf16>
    "tpu.trace_start"() <{level = 10 : i32, message = "bqk,bkd->bqd"}> : () -> ()
    %cst_45 = arith.constant dense<0.000000e+00> : vector<2x8x8xf32>
    %116 = tpu.matmul %115, %104, %cst_45 {dimension_numbers = #tpu.dot_dimension_numbers<[2], [1], [1], [2], [0, 0, 0, 1, 1, 2], [0], [0]>} : vector<2x8x8xbf16>, vector<2x8x8xbf16>, vector<2x8x8xf32> -> vector<2x8x8xf32>
    "tpu.trace_stop"() : () -> ()
    %117 = tpu.reciprocal %114 : vector<2x8x1xf32> -> vector<2x8x1xf32>
    %118 = vector.broadcast %117 : vector<2x8x1xf32> to vector<2x8x8xf32>
    %119 = arith.mulf %116, %118 : vector<2x8x8xf32>
    %120 = vector.shape_cast %119 : vector<2x8x8xf32> to vector<16x8xf32>
    %c0_46 = arith.constant 0 : index
    %c24 = arith.constant 24 : index
    %121 = vector.load %arg16[%c0_46, %c24] : memref<16x32xf32, #tpu.memory_space<vmem>>, vector<16x8xf32>
    tpu.vector_store %arg16[%c0_46, %c24], %120 {strides = array<i32>} : memref<16x32xf32, #tpu.memory_space<vmem>>, vector<16x8xf32>,
    %c0_47 = arith.constant 0 : index
    %c0_48 = arith.constant 0 : index
    %122 = vector.load %arg16[%c0_47, %c0_48] : memref<16x32xf32, #tpu.memory_space<vmem>>, vector<16x32xf32>
    %123 = arith.truncf %122 : vector<16x32xf32> to vector<16x32xbf16>
    %c0_49 = arith.constant 0 : index
    %c0_50 = arith.constant 0 : index
    %124 = vector.load %arg8[%c0_49, %c0_50] : memref<32x32xbf16, #tpu.memory_space<vmem>>, vector<32x32xbf16>
    %cst_51 = arith.constant dense<0.000000e+00> : vector<16x32xf32>
    %125 = tpu.matmul %123, %124, %cst_51 {dimension_numbers = #tpu.dot_dimension_numbers<[1], [0], [0], [1], [0, 0, 1, 1], [], []>} : vector<16x32xbf16>, vector<32x32xbf16>, vector<16x32xf32> -> vector<16x32xf32>
    %c0_52 = arith.constant 0 : index
    %c0_53 = arith.constant 0 : index
    %126 = vector.load %arg12[%c0_52, %c0_53] : memref<1x32xf32, #tpu.memory_space<vmem>>, vector<1x32xf32>
    %127 = vector.broadcast %126 : vector<1x32xf32> to vector<16x32xf32>
    %128 = arith.addf %125, %127 : vector<16x32xf32>
    %129 = arith.addf %1, %128 : vector<16x32xf32>
    %cst_54 = arith.constant dense<0.000000e+00> : vector<16xf32>
    %130 = vector.multi_reduction <add>, %129, %cst_54 [1] : vector<16x32xf32> to vector<16xf32>
    %131 = vector.shape_cast %130 : vector<16xf32> to vector<16x1xf32>
    %cst_55 = arith.constant 3.200000e+01 : f32
    %132 = vector.broadcast %cst_55 : f32 to vector<16x1xf32>
    %133 = arith.divf %131, %132 : vector<16x1xf32>
    %134 = vector.broadcast %133 : vector<16x1xf32> to vector<16x32xf32>
    %135 = arith.subf %129, %134 : vector<16x32xf32>
    %136 = arith.mulf %135, %135 : vector<16x32xf32>
    %cst_56 = arith.constant dense<0.000000e+00> : vector<16xf32>
    %137 = vector.multi_reduction <add>, %136, %cst_56 [1] : vector<16x32xf32> to vector<16xf32>
    %138 = vector.shape_cast %137 : vector<16xf32> to vector<16x1xf32>
    %cst_57 = arith.constant 3.200000e+01 : f32
    %139 = vector.broadcast %cst_57 : f32 to vector<16x1xf32>
    %140 = arith.divf %138, %139 : vector<16x1xf32>
    %cst_58 = arith.constant 9.99999974E-6 : f32
    %141 = vector.broadcast %cst_58 : f32 to vector<16x1xf32>
    %142 = arith.addf %140, %141 : vector<16x1xf32>
    %143 = math.rsqrt %142 : vector<16x1xf32>
    %144 = vector.broadcast %143 : vector<16x1xf32> to vector<16x32xf32>
    %145 = arith.mulf %135, %144 : vector<16x32xf32>
    %c0_59 = arith.constant 0 : index
    %c0_60 = arith.constant 0 : index
    %146 = vector.load %arg13[%c0_59, %c0_60] : memref<1x32xf32, #tpu.memory_space<vmem>>, vector<1x32xf32>
    %147 = vector.broadcast %146 : vector<1x32xf32> to vector<16x32xf32>
    %148 = arith.mulf %145, %147 : vector<16x32xf32>
    %c0_61 = arith.constant 0 : index
    %c0_62 = arith.constant 0 : index
    %149 = vector.load %arg14[%c0_61, %c0_62] : memref<1x32xf32, #tpu.memory_space<vmem>>, vector<1x32xf32>
    %150 = vector.broadcast %149 : vector<1x32xf32> to vector<16x32xf32>
    %151 = arith.addf %148, %150 : vector<16x32xf32>
    %152 = vector.shape_cast %151 : vector<16x32xf32> to vector<2x8x32xf32>
    %c0_63 = arith.constant 0 : index
    %c0_64 = arith.constant 0 : index
    %c0_65 = arith.constant 0 : index
    %153 = vector.load %arg15[%c0_63, %c0_64, %c0_65] : memref<2x8x32xf32, #tpu.memory_space<vmem>>, vector<2x8x32xf32>
    tpu.vector_store %arg15[%c0_63, %c0_64, %c0_65], %152 {strides = array<i32>} : memref<2x8x32xf32, #tpu.memory_space<vmem>>, vector<2x8x32xf32>,
    return
  }
  func.func @transform_0(%arg0: i32) -> (i32, i32, i32) {
    %c0_i32 = arith.constant 0 : i32
    %c0_i32_0 = arith.constant 0 : i32
    %c0_i32_1 = arith.constant 0 : i32
    return %arg0, %c0_i32, %c0_i32_0 : i32, i32, i32
  }
  func.func @transform_1(%arg0: i32) -> (i32, i32, i32) {
    %c0_i32 = arith.constant 0 : i32
    %c0_i32_0 = arith.constant 0 : i32
    %c0_i32_1 = arith.constant 0 : i32
    return %arg0, %c0_i32, %c0_i32_0 : i32, i32, i32
  }
  func.func @transform_2(%arg0: i32) -> (i32, i32, i32) {
    %c0_i32 = arith.constant 0 : i32
    %c0_i32_0 = arith.constant 0 : i32
    %c0_i32_1 = arith.constant 0 : i32
    return %arg0, %c0_i32, %c0_i32_0 : i32, i32, i32
  }
  func.func @transform_3(%arg0: i32) -> (i32, i32, i32) {
    %c0_i32 = arith.constant 0 : i32
    %c0_i32_0 = arith.constant 0 : i32
    %c0_i32_1 = arith.constant 0 : i32
    return %arg0, %c0_i32, %c0_i32_0 : i32, i32, i32
  }
  func.func @transform_4(%arg0: i32) -> (i32, i32) {
    %c0_i32 = arith.constant 0 : i32
    %c0_i32_0 = arith.constant 0 : i32
    %c0_i32_1 = arith.constant 0 : i32
    return %c0_i32, %c0_i32_0 : i32, i32
  }
  func.func @transform_5(%arg0: i32) -> (i32, i32) {
    %c0_i32 = arith.constant 0 : i32
    %c0_i32_0 = arith.constant 0 : i32
    %c0_i32_1 = arith.constant 0 : i32
    return %c0_i32, %c0_i32_0 : i32, i32
  }
  func.func @transform_6(%arg0: i32) -> (i32, i32) {
    %c0_i32 = arith.constant 0 : i32
    %c0_i32_0 = arith.constant 0 : i32
    %c0_i32_1 = arith.constant 0 : i32
    return %c0_i32, %c0_i32_0 : i32, i32
  }
  func.func @transform_7(%arg0: i32) -> (i32, i32) {
    %c0_i32 = arith.constant 0 : i32
    %c0_i32_0 = arith.constant 0 : i32
    %c0_i32_1 = arith.constant 0 : i32
    return %c0_i32, %c0_i32_0 : i32, i32
  }
  func.func @transform_8(%arg0: i32) -> (i32, i32) {
    %c0_i32 = arith.constant 0 : i32
    %c0_i32_0 = arith.constant 0 : i32
    %c0_i32_1 = arith.constant 0 : i32
    return %c0_i32, %c0_i32_0 : i32, i32
  }
  func.func @transform_9(%arg0: i32) -> (i32, i32) {
    %c0_i32 = arith.constant 0 : i32
    %c0_i32_0 = arith.constant 0 : i32
    %c0_i32_1 = arith.constant 0 : i32
    return %c0_i32, %c0_i32_0 : i32, i32
  }
  func.func @transform_10(%arg0: i32) -> (i32, i32) {
    %c0_i32 = arith.constant 0 : i32
    %c0_i32_0 = arith.constant 0 : i32
    %c0_i32_1 = arith.constant 0 : i32
    return %c0_i32, %c0_i32_0 : i32, i32
  }
  func.func @transform_11(%arg0: i32) -> (i32, i32) {
    %c0_i32 = arith.constant 0 : i32
    %c0_i32_0 = arith.constant 0 : i32
    %c0_i32_1 = arith.constant 0 : i32
    return %c0_i32, %c0_i32_0 : i32, i32
  }
  func.func @transform_12(%arg0: i32) -> (i32, i32) {
    %c0_i32 = arith.constant 0 : i32
    %c0_i32_0 = arith.constant 0 : i32
    %c0_i32_1 = arith.constant 0 : i32
    return %c0_i32, %c0_i32_0 : i32, i32
  }
  func.func @transform_13(%arg0: i32) -> (i32, i32) {
    %c0_i32 = arith.constant 0 : i32
    %c0_i32_0 = arith.constant 0 : i32
    %c0_i32_1 = arith.constant 0 : i32
    return %c0_i32, %c0_i32_0 : i32, i32
  }
  func.func @transform_14(%arg0: i32) -> (i32, i32, i32) {
    %c0_i32 = arith.constant 0 : i32
    %c0_i32_0 = arith.constant 0 : i32
    %c0_i32_1 = arith.constant 0 : i32
    return %arg0, %c0_i32, %c0_i32_0 : i32, i32, i32
  }
}

</mosaic_0001>

<bundles_post_ra>
// kernel: tpu_custom_call.1
= control target key start
LH: loop header
LB: loop body
LE: loop exit
PB: predicated region body
PF: predicated region fallthrough
CT: control target
= control target key end

     0   :  { %s2841_s0 = inlined_call_operand.hbm [shape: f32[4,8,32], index: 0, kind: input, shape index: {}]   ;;  %s2842_s1 = inlined_call_operand.hbm [shape: f32[4,8,32], index: 1, kind: input, shape index: {}]   ;;  %s2843_s2 = inlined_call_operand.hbm [shape: f32[4,8,32], index: 2, kind: input, shape index: {}]   ;;  %s2844_s3 = inlined_call_operand.hbm [shape: f32[4,1,8], index: 3, kind: input, shape index: {}]   ;;  %s2845_s4 = inlined_call_operand.hbm [shape: bf16[32,32], index: 4, kind: input, shape index: {}]   ;;  %s2846_s5 = inlined_call_operand.hbm [shape: bf16[32,32], index: 5, kind: input, shape index: {}]   ;;  %s2847_s6 = inlined_call_operand.hbm [shape: bf16[32,32], index: 6, kind: input, shape index: {}]   ;;  %s2848_s7 = inlined_call_operand.hbm [shape: bf16[32,32], index: 7, kind: input, shape index: {}]   ;;  %s2849_s8 = inlined_call_operand.vmem [shape: f32[1,32], index: 8, kind: input, shape index: {}]   ;;  %s2850_s9 = inlined_call_operand.vmem [shape: f32[1,32], index: 9, kind: input, shape index: {}]   ;;  %s2851_s10 = inlined_call_operand.vmem [shape: f32[1,32], index: 10, kind: input, shape index: {}]   ;;  %s2852_s11 = inlined_call_operand.vmem [shape: f32[1,32], index: 11, kind: input, shape index: {}]   ;;  %s2853_s12 = inlined_call_operand.vmem [shape: f32[1,32], index: 12, kind: input, shape index: {}]   ;;  %s2854_s13 = inlined_call_operand.vmem [shape: f32[1,32], index: 13, kind: input, shape index: {}]   ;;  %s2855_s14 = inlined_call_operand.hbm [shape: f32[4,8,32], index: 14, kind: output, shape index: {}]  }
   0x1   :  { %2874 = sst [smem:[#allocation31_spill]] %s2842_s1 }
   0x2   :  { %2875 = sst [smem:[#allocation32_spill]] %s2845_s4 }
   0x3   :  { %2876 = sst [smem:[#allocation33_spill]] %s2846_s5 }
   0x4   :  { %2877 = sst [smem:[#allocation34_spill]] %s2850_s9 }
   0x5   :  { %2878 = sst [smem:[#allocation35_spill]] %s2851_s10 }
   0x6   :  { %2879 = sst [smem:[#allocation36_spill]] %s2852_s11 }
   0x7   :  { %2880 = sst [smem:[#allocation37_spill]] %s2853_s12 }
   0x8   :  { %2881 = sst [smem:[#allocation38_spill]] %s2854_s13 }
   0x9   :  { %2882 = sst [smem:[#allocation39_spill]] %s2855_s14 }
   0xa   :  { %19 = vsyncpa [#allocation4], 0 }
   0xb   :  { %21 = vsyncpa [#allocation4 + $0x1], 0 }
   0xc   :  { %22 = vsyncpa [#allocation7], 0 }
   0xd   :  { %24 = vsyncpa [#allocation7 + $0x1], 0 }
   0xe   :  { %25 = vsyncpa [#allocation10], 0 }
   0xf   :  { %27 = vsyncpa [#allocation10 + $0x1], 0 }
  0x10   :  { %28 = vsyncpa [#allocation13], 0 }
  0x11   :  { %29 = vsyncpa [#allocation16], 0 }
  0x12   :  { %30 = vsyncpa [#allocation5], 0 }
  0x13   :  { %32 = vsyncpa [#allocation5 + $0x1], 0  ;;  %s2394_s29 = smov 0   ;;  %s2396_s30 = smov 0  }
  0x14   :  { %s2398_s15 = smov 0   ;;  %s2400_s16 = smov 0  }
  0x15 LB: > { %2883 = sst [smem:[#allocation25_spill]] %s2287_s29  ;;  %s2415_s17 = sadd.s32 4294967295, %s2299_s16   ;;  %s2299_s16 = sphi %s2400_s16, %s2921_s16   ;;  %s2295_s15 = sphi %s2398_s15, %s2923_s15   ;;  %s2291_s30 = sphi %s2396_s30, %s2925_s30   ;;  %s2287_s29 = sphi %s2394_s29, %s2924_s29  }
  0x16   : > { %2884 = sst [smem:[#allocation26_spill]] %s2295_s15  ;;  %s1714_s18 = sadd.s32 4294967294, %s2299_s16  }
  0x17   : > { %p58_p0 = scmp.ne.s32.totalorder %s2291_s30, %s2287_s29  ;;  %p2868_p1 = scmp.eq.s32.totalorder %s2415_s17, 0 }
  0x18   : > { %p370_p2 = scmp.eq.s32.totalorder %s2415_s17, 1  ;;  %p376_p3 = scmp.eq.s32.totalorder %s1714_s18, 1 }
  0x19   : > { %p2424_p4 = por %p2868_p1, %p58_p0  ;;  %p1715_p5 = scmp.ge.s32.totalorder %s2299_s16, 1 }
  0x1a   : > { %p2429_p6 = por %p376_p3, %p58_p0  ;;  %p383_p7 = scmp.lt.s32.totalorder %s2299_s16, 3 }
  0x1b   : > { %s2888_s4 = sld [smem:[#allocation32_spill]]  ;;  %s2301_s25 = smov [#allocation11]  }
  0x1c   : > { %s2886_s20 = scalar_select %p2429_p6, 1, 0 }
  0x1d   : > { %p2437_p8 = pnand %p1715_p5, %p383_p7  ;;  %s396_s26 = sshll.u32 %s2301_s25, 4  ;;  %s397_s26 = int_to_ptr.vmem [resolvable:$true] %s396_s26 }
  0x1e   : > { %2887 = sst [smem:[#allocation27_spill]] %s2886_s20  ;;  %s2857_s22 = smov 64  }
  0x1f   : > { %p1837_p9 = pneg %p2437_p8  ;;  %s2891_s5 = sld [smem:[#allocation33_spill]] }
  0x20   : > { %s2859_s25 = smov 4   ;;  %s2464_s28 = sadd.s32 1, %s2299_s16  }
  0x21   : > { %s394_s23 = sshll.u32 %s2888_s4, 4  ;;  %p2445_p10 = pnand %p1837_p9, %p2868_p1  ;;  %s395_s23 = int_to_ptr.hbm [resolvable:$true] %s394_s23 }
  0x22   : > { %s2304_s4 = smov [#allocation12]   ;;  %2892 = sst [smem:[#allocation28_spill]] %s2464_s28 }
  0x23   : > { %1840 = dma.hbm_to_vmem [thread:$0]  (!%p2445_p10), %s395_s23, 256, %s397_s26, [#allocation10], %s2857_s22, %s2857_s22, %s2859_s25  }
  0x24   : > { %s410_s20 = sshll.u32 %s2304_s4, 4  ;;  %s45_s18 = sadd.s32 1, %s2295_s15  ;;  %s411_s20 = int_to_ptr.vmem [resolvable:$true] %s410_s20 }
  0x25   : > { %s408_s21 = sshll.u32 %s2891_s5, 4  ;;  %s42_s5 = ssub.s32 %s2299_s16, %s2464_s28  ;;  %s409_s21 = int_to_ptr.hbm [resolvable:$true] %s408_s21 }
  0x26   : > { %1843 = dma.hbm_to_vmem [thread:$0]  (!%p2445_p10), %s409_s21, 256, %s411_s20, [#allocation13], %s2857_s22, %s2857_s22, %s2859_s25  }
  0x27   : > { %p52_p12 = scmp.ne.s32.totalorder %s2295_s15, %s2291_s30  ;;  %p43_p13 = scmp.eq.s32.totalorder %s42_s5, 0 }
  0x28   : > { %p53_p0 = scmp.eq.s32.totalorder %s2299_s16, 0  ;;  %p1871_p5 = scmp.lt.s32.totalorder %s2299_s16, 2 }
  0x29   : > { %p2474_p3 = por %p370_p2, %p52_p12  ;;  %s2483_s26 = sand.u32 1, %s2295_s15  }
  0x2a   : > { %s2480_s4 = scalar_select %p43_p13, %s2295_s15, %s45_s18  }
  0x2b   : > { %s2893_s23 = scalar_select %p2474_p3, 1, 0 }
  0x2c   : > { %2895 = sst [smem:[#allocation30_spill]] %s2480_s4  ;;  %p54_p7 = por %p53_p0, %p52_p12 }
  0x2d   : > { %2894 = sst [smem:[#allocation29_spill]] %s2893_s23  ;;  %s2486_s20 = sshll.u32 %s2483_s26, 4 }
  0x2e   : > { %s2489_s21 = sshll.u32 %s2299_s16, 4  ;;  %p2491_p9 = pnand %p1871_p5, %p54_p7 }
  0x2f   : > { %s2869_s22 = sand.u32 1, %s2299_s16   ;;  %s2897_s1 = sld [smem:[#allocation31_spill]] }
  0x30   : > { %s496_s28 = scalar_lea.vmem [#allocation6], %s2486_s20  ;;  %s2503_s23 = scalar_lea.sflag [#allocation7], %s2869_s22 }
  0x31   : > { %s504_s29 = sshll.u32 %s496_s28, 4  ;;  %p2037_p12 = pneg %p2491_p9  ;;  %s505_s29 = int_to_ptr.vmem [resolvable:$true] %s504_s29 }
  0x35   : > { %s501_s4 = scalar_lea.hbm %s2897_s1, %s2489_s21 }
  0x36   : > { %s502_s15 = sshll.u32 %s501_s4, 4  ;;  %s2040_s4 = scalar_lea.hbm %s2897_s1, 32  ;;  %s503_s15 = int_to_ptr.hbm [resolvable:$true] %s502_s15 }
  0x37   : > { %s2033_s14 = sshra.s32 %s503_s15, 4  ;;  %s2034_s14 = int_to_ptr.hbm [resolvable:$true] %s2033_s14 }
  0x38   : > { %s2035_s13 = scalar_lea.hbm %s2034_s14, 16  ;;  %p2041_p5 = scmp.lt.s32.totalorder %s2034_s14, %s2897_s1 }
  0x39   : > { %p2036_p2 = scmp.ne.s32.totalorder %s2034_s14, %s2035_s13  ;;  %p2042_p7 = scmp.lt.s32.totalorder %s2040_s4, %s2035_s13 }
  0x3b   : > { %p2038_p13 = pnand %p2037_p12, %p2036_p2  ;;  %p2043_p11 = por %p2042_p7, %p2041_p5 }
  0x3d   : > { %p2039_p0 = pneg %p2038_p13 }
  0x3f   : > { %p2044_p1 = pnand %p2043_p11, %p2039_p0 }
  0x41   : > { %2047 = shalt.err (!%p2044_p1)
}
  0x42   : > { %s2870_s22 = smov 128   ;;  %s2872_s11 = smov 8  }
  0x43   : > { %1856 = dma.hbm_to_vmem [thread:$0]  (!%p2491_p9), %s503_s15, 256, %s505_s29, %s2503_s23, %s2870_s22, %s2870_s22, %s2872_s11  }
  0x44   : > { %s422_s13 = sshll.u32 %s2847_s6, 4  ;;  %s2307_s14 = smov [#allocation14]   ;;  %s423_s13 = int_to_ptr.hbm [resolvable:$true] %s422_s13 }
  0x45   : > { %s424_s18 = sshll.u32 %s2307_s14, 4  ;;  %s436_s1 = sshll.u32 %s2848_s7, 4  ;;  %s425_s18 = int_to_ptr.vmem [resolvable:$true] %s424_s18  ;;  %s437_s1 = int_to_ptr.hbm [resolvable:$true] %s436_s1 }
  0x46   : > { %s2898_s10 = smov 4   ;;  %s2899_s9 = smov 64  }
  0x47   : > { %1846 = dma.hbm_to_vmem [thread:$0]  (!%p2445_p10), %s423_s13, 256, %s425_s18, [#allocation13], %s2899_s9, %s2899_s9, %s2898_s10  }
  0x48   : > { %s2308_s29 = smov [#allocation15]   ;;  %s479_s22 = scalar_lea.hbm %s2841_s0, %s2489_s21 }
  0x49   : > { %s438_s15 = sshll.u32 %s2308_s29, 4  ;;  %s480_s14 = sshll.u32 %s479_s22, 4  ;;  %s439_s15 = int_to_ptr.vmem [resolvable:$true] %s438_s15  ;;  %s481_s14 = int_to_ptr.hbm [resolvable:$true] %s480_s14 }
  0x4a   : > { %1849 = dma.hbm_to_vmem [thread:$0]  (!%p2445_p10), %s437_s1, 256, %s439_s15, [#allocation16], %s2899_s9, %s2899_s9, %s2898_s10  }
  0x4b   : > { %s474_s4 = scalar_lea.vmem [#allocation3], %s2486_s20  ;;  %s471_s11 = scalar_lea.sflag [#allocation4], %s2483_s26 }
  0x4c   : > { %s482_s28 = sshll.u32 %s474_s4, 4  ;;  %s2123_s13 = sshra.s32 %s481_s14, 4  ;;  %s483_s28 = int_to_ptr.vmem [resolvable:$true] %s482_s28  ;;  %s2124_s13 = int_to_ptr.hbm [resolvable:$true] %s2123_s13 }
  0x4d   : > { %s2125_s18 = scalar_lea.hbm %s2124_s13, 16  ;;  %s2130_s25 = scalar_lea.hbm %s2841_s0, 32 }
  0x4e   : > { %p2126_p1 = scmp.ne.s32.totalorder %s2124_s13, %s2125_s18  ;;  %p2131_p10 = scmp.lt.s32.totalorder %s2124_s13, %s2841_s0 }
  0x4f   : > { %p2132_p13 = scmp.lt.s32.totalorder %s2130_s25, %s2125_s18 }
  0x50   : > { %p2128_p11 = pnand %p2126_p1, %p2037_p12 }
  0x51   : > { %p2133_p0 = por %p2132_p13, %p2131_p10 }
  0x52   : > { %p2129_p2 = pneg %p2128_p11 }
  0x54   : > { %p2134_p5 = pnand %p2133_p0, %p2129_p2 }
  0x56   : > { %2137 = shalt.err (!%p2134_p5)
}
  0x57   : > { %s2900_s9 = smov 8   ;;  %s2901_s10 = smov 128  }
  0x58   : > { %1853 = dma.hbm_to_vmem [thread:$0]  (!%p2491_p9), %s481_s14, 256, %s483_s28, %s471_s11, %s2901_s10, %s2901_s10, %s2900_s9  }
  0x59   : > { %s523_s4 = scalar_lea.hbm %s2843_s2, %s2489_s21  ;;  %s518_s27 = scalar_lea.vmem [#allocation8], %s2486_s20 }
  0x5a   : > { %s524_s29 = sshll.u32 %s523_s4, 4  ;;  %s526_s13 = sshll.u32 %s518_s27, 4  ;;  %s525_s29 = int_to_ptr.hbm [resolvable:$true] %s524_s29  ;;  %s527_s13 = int_to_ptr.vmem [resolvable:$true] %s526_s13 }
  0x5b   : > { %s2153_s18 = sshra.s32 %s525_s29, 4  ;;  %s2160_s11 = scalar_lea.hbm %s2843_s2, 32  ;;  %s2154_s18 = int_to_ptr.hbm [resolvable:$true] %s2153_s18 }
  0x5c   : > { %s2155_s25 = scalar_lea.hbm %s2154_s18, 16  ;;  %p2161_p2 = scmp.lt.s32.totalorder %s2154_s18, %s2843_s2 }
  0x5d   : > { %p2156_p7 = scmp.ne.s32.totalorder %s2154_s18, %s2155_s25  ;;  %p2162_p10 = scmp.lt.s32.totalorder %s2160_s11, %s2155_s25 }
  0x5f   : > { %p2158_p1 = pnand %p2156_p7, %p2037_p12  ;;  %p2163_p13 = por %p2162_p10, %p2161_p2 }
  0x61   : > { %p2159_p11 = pneg %p2158_p1 }
  0x63   : > { %p2164_p0 = pnand %p2163_p13, %p2159_p11 }
  0x65   : > { %2167 = shalt.err (!%p2164_p0)
}
  0x66   : > { %1859 = dma.hbm_to_vmem [thread:$0]  (!%p2491_p9), %s525_s29, 256, %s527_s13, %s2503_s23, %s2901_s10, %s2901_s10, %s2900_s9  }
  0x67   : > { %s1730_s20 = sshll.u32 %s2483_s26, 1  ;;  %s1731_s21 = sshll.u32 %s2299_s16, 1 }
  0x68   : > { %s544_s4 = scalar_lea.hbm %s2844_s3, %s1731_s21  ;;  %s540_s18 = scalar_lea.vmem [#allocation9], %s1730_s20 }
  0x69   : > { %s545_s27 = sshll.u32 %s544_s4, 4  ;;  %s547_s25 = sshll.u32 %s540_s18, 4  ;;  %s546_s27 = int_to_ptr.hbm [resolvable:$true] %s545_s27  ;;  %s548_s25 = int_to_ptr.vmem [resolvable:$true] %s547_s25 }
  0x6a   : > { %s2902_s12 = sand.u32 1, %s2299_s16   ;;  %s2183_s11 = sshra.s32 %s546_s27, 4  ;;  %s2184_s11 = int_to_ptr.hbm [resolvable:$true] %s2183_s11 }
  0x6b   : > { %s537_s1 = scalar_lea.sflag [#allocation10], %s2902_s12  ;;  %s2185_s14 = scalar_lea.hbm %s2184_s11, 2 }
  0x6c   : > { %p2186_p5 = scmp.ne.s32.totalorder %s2184_s11, %s2185_s14  ;;  %s2190_s9 = scalar_lea.hbm %s2844_s3, 4 }
  0x6d   : > { %p2191_p11 = scmp.lt.s32.totalorder %s2184_s11, %s2844_s3  ;;  %p2192_p2 = scmp.lt.s32.totalorder %s2190_s9, %s2185_s14 }
  0x6e   : > { %p2188_p7 = pnand %p2186_p5, %p2037_p12 }
  0x6f   : > { %p2193_p10 = por %p2192_p2, %p2191_p11 }
  0x70   : > { %p2189_p1 = pneg %p2188_p7 }
  0x72   : > { %p2194_p13 = pnand %p2193_p10, %p2189_p1 }
  0x74   : > { %2197 = shalt.err (!%p2194_p13)
}
  0x75   : > { %s2309_s13 = smov 16   ;;  %s2310_s28 = smov 1  }
  0x76   : > { %1862 = dma.hbm_to_vmem [thread:$0]  (!%p2491_p9), %s546_s27, 32, %s548_s25, %s537_s1, %s2309_s13, %s2309_s13, %s2310_s28  }
  0x77   : > { %559 = sbr.rel (%p2437_p8) target bundleno = 1385 (0x569), region = 76  ;;  %s2599_s20 = sand.u32 (!%p2437_p8), 1, %s2291_s30  }
  0x78   : > { %s2602_s21 = sshll.u32 (!%p2437_p8), %s2599_s20, 4  ;;  %s562_s22 = scalar_lea.sflag (!%p2437_p8), [#allocation4], %s2599_s20 }
  0x79   : > { %s565_s15 = scalar_lea.vmem (!%p2437_p8), [#allocation3], %s2602_s21 }
  0x7c   : > { %2258 = dma.done.wait (%p2424_p4), %s562_s22, 256  }
  0x7d   : > { %2260 = vsyncadd (%p2424_p4), %s562_s22, 4294967040  ;;  %s571_s24 = sand.u32 1, %s2415_s17   ;;  %s575_s4 = scalar_lea.vmem [#allocation6], %s2602_s21 }
  0x7e   : > { %s572_s5 = scalar_lea.sflag [#allocation7], %s571_s24 }
  0x7f   : > { %2262 = dma.done.wait (%p2424_p4), %s572_s5, 512  }
  0x80   : > { %2264 = vsyncadd (%p2424_p4), %s572_s5, 4294966784  ;;  %s1736_s27 = sshll.u32 %s2599_s20, 1  ;;  %s585_s18 = scalar_lea.vmem [#allocation8], %s2602_s21 }
  0x81   : > { %s592_s25 = scalar_lea.sflag [#allocation10], %s571_s24  ;;  %s2618_s12 = scalar_lea.vmem [#allocation9], %s1736_s27 }
  0x82   : > { %2266 = dma.done.wait (%p2424_p4), %s592_s25, 32  }
  0x83   : > { %2268 = vsyncadd (%p2424_p4), %s592_s25, 4294967264  ;;  %p2903_p8 = scmp.eq.s32.totalorder %s2415_s17, 0 }
  0x85   : > { %2270 = dma.done.wait (%p2903_p8), [#allocation10], 256   ;;  %p2904_p9 = pmov %p2903_p8 }
  0x86   : > { %p2905_p12 = pmov %p2903_p8 }
  0x87   : > { %2272 = vsyncadd (%p2904_p9), [#allocation10], 4294967040 }
  0x88   : > { %2274 = dma.done.wait (%p2905_p12), [#allocation13], 512   ;;  %p2906_p0 = pmov %p2903_p8 }
  0x8a   : > { %2276 = vsyncadd (%p2906_p0), [#allocation13], 4294966784  ;;  %p2907_p5 = pmov %p2906_p0 }
  0x8b   : > { %p2908_p7 = pmov %p2906_p0 }
  0x8c   : > { %2278 = dma.done.wait (%p2907_p5), [#allocation16], 256  }
  0x8d   : > { %2280 = vsyncadd (%p2908_p7), [#allocation16], 4294967040  ;;  %v1803_v0 = vld [vmem:[#allocation11 + $0x8] sm:$0xff]  ;;  %v1805_v1 = vld [vmem:[#allocation12 + $0x8] sm:$0xff]  ;;  %vm709_vm0 = vcmask 261120   ;;  %s2909_s23 = sld [smem:[#allocation34_spill]] }
  0x8e   : > { %v1802_v2 = vld [vmem:[#allocation11] sm:$0xff]  ;;  %v1804_v3 = vld [vmem:[#allocation12] sm:$0xff]  ;;  %719 = vmatpush.bf16.msra.mxu0 %v1803_v0  ;;  %759 = vmatpush.bf16.msra.mxu1 %v1805_v1  ;;  %v1807_v8 = vld [vmem:[#allocation14 + $0x8] sm:$0xff]  ;;  %vm819_vm1 = vcmask 64512   ;;  %s2311_s26 = smov 112   ;;  %s2312_s9 = smov 120  }
  0x8f   : > { %v2636_v4 = vld [vmem:[%s565_s15] sm:$0xff]  ;;  %v2638_v5 = vld [vmem:[%s565_s15 + $0x8] sm:$0xff]  ;;  %797 = vmatpush.bf16.msra.mxu2 %v1807_v8  ;;  %s2910_s13 = sld [smem:[#allocation35_spill]]  ;;  %s2313_s28 = smov 104   ;;  %vm881_vm2 = vcmask 1043456  }
  0x90   : > { %v684_v6 = vld [vmem:[%s575_s4] sm:$0xff]  ;;  %v685_v7 = vld [vmem:[%s575_s4 + $0x8] sm:$0xff]  ;;  %v688_v12 = vpack.c.bf16 %v2638_v5, %v2636_v4  ;;  %s2314_s22 = smov 8   ;;  %s2315_s15 = smov 16  }
  0x91   : > { %v1806_v9 = vld [vmem:[#allocation14] sm:$0xff]  ;;  %v729_v13 = vpack.c.bf16 %v685_v7, %v684_v6  ;;  %v1927_v15 = vld [vmem:[%s2849_s8] ss:$0 sm:$0xff]  ;;  %v2686_v1 = vld [vmem:[%s2618_s12] ss:$0 sm:$0xff]  ;;  %s2316_s24 = smov 24  }
  0x92   : > { %v686_v10 = vld [vmem:[%s585_s18] sm:$0xff]  ;;  %v687_v11 = vld [vmem:[%s585_s18 + $0x8] sm:$0xff]  ;;  %720 = vmatpush.bf16.msra.mxu0 %v1802_v2  ;;  %760 = vmatpush.bf16.msra.mxu1 %v1804_v3  ;;  %s2913_s27 = sld [smem:[#allocation36_spill]]  ;;  %s1810_s14 = sshll.u32 %s2415_s17, 4 }
  0x93   : > { %v767_v14 = vpack.c.bf16 %v687_v11, %v686_v10  ;;  %798 = vmatpush.bf16.msra.mxu2 %v1806_v9  ;;  %v1928_v16 = vld [vmem:[%s2909_s23] ss:$0 sm:$0xff]  ;;  %v2691_v6 = vld [vmem:[%s2618_s12 + $0x1] ss:$0 sm:$0xff]  ;;  %s2914_s12 = sld [smem:[#allocation37_spill]]  ;;  %s675_s23 = scalar_lea.vmem [#allocation17], %s2602_s21 }
  0x94   : > { %s2915_s11 = sld [smem:[#allocation38_spill]]  ;;  %s1522_s17 = scalar_lea.sflag [#allocation5], %s2599_s20 }
  0x95   : > { %1750 = vmatmul.msk.bf16.vlgmr.msra.gmra.mxu0 %vm709_vm0, %v688_v12  ;;  %1759 = vmatmul.msk.bf16.vlgmr.msra.gmra.mxu1 %vm709_vm0, %v729_v13  ;;  %v1929_v42 = vld [vmem:[%s2910_s13] ss:$0 sm:$0xff]  ;;  %s2916_s10 = sld [smem:[#allocation39_spill]] }
  0x96   : > { %1768 = vmatmul.msk.bf16.vlgmr.msra.gmra.mxu2 %vm709_vm0, %v767_v14 }
  0x9b   : > { %s1533_s13 = scalar_lea.hbm %s2916_s10, %s1810_s14 }
 0x112   : > { %v722_v17 = vpop.f32.mrf.mxu0  ;;  %v762_v18 = vpop.f32.mrf.mxu1 }
 0x113   : > { %v723_v19 = vadd.f32 %v1927_v15, %v722_v17  ;;  %v763_v20 = vadd.f32 %v1928_v16, %v762_v18 }
 0x115   : > { %v727_v21 = vmul.f32 0.35355338, %v723_v19  ;;  %v809_v22 = vpack.c.bf16 %v763_v20, %v763_v20 }
 0x117   : > { %v807_v23 = vpack.c.bf16 %v727_v21, %v727_v21  ;;  %v955_v24 = vunpack.c.l.b16 %v809_v22  ;;  %v824_v25 = vsel %vm819_vm1, %v809_v22, 0 }
 0x118   : > { %833 = vmatpush.bf16.xpose.msra.mxu3 %v824_v25 }
 0x119   : > { %v950_v26 = vunpack.c.l.b16 %v807_v23  ;;  %v956_v27 = vpack.c.b16 %v955_v24, %v955_v24  ;;  %v800_v35 = vpop.f32.mrf.mxu2 }
 0x11a   : > { %v724_v28 = vpop.f32.mrf.mxu0  ;;  %v764_v29 = vpop.f32.mrf.mxu1  ;;  %v801_v45 = vadd.f32 %v1929_v42, %v800_v35 }
 0x11b   : > { %v725_v30 = vadd.f32 %v1927_v15, %v724_v28  ;;  %v765_v31 = vadd.f32 %v1928_v16, %v764_v29  ;;  %1118 = vrot.lane.b32.xlu2 %v956_v27, %s2311_s26  ;;  %957 = vrot.lane.b32.xlu0 %v956_v27, %s2312_s9  ;;  %v951_v32 = vpack.c.b16 %v950_v26, %v950_v26 }
 0x11c   : > { %v811_v47 = vpack.c.bf16 %v801_v45, %v801_v45 }
 0x11d   : > { %v728_v33 = vmul.f32 0.35355338, %v725_v30  ;;  %v810_v34 = vpack.c.bf16 %v765_v31, %v765_v31  ;;  %952 = vrot.lane.b32.xlu1 %v951_v32, %s2312_s9 }
 0x11e   : > { %v1028_v49 = vunpack.c.l.b16 %v811_v47  ;;  %v883_v2 = vsel %vm881_vm2, %v811_v47, 0 }
 0x11f   : > { %v808_v36 = vpack.c.bf16 %v728_v33, %v728_v33  ;;  %v984_v37 = vunpack.c.l.b16 %v810_v34  ;;  %1769 = vmatmul.msk.bf16.vlgmr.msra.gmra.mxu3 %vm819_vm1, %v807_v23  ;;  %v843_v38 = vsel %vm819_vm1, %v810_v34, 0  ;;  %892 = vmatpush.bf16.msrb.mxu1 %v883_v2 }
 0x120   : > { %852 = vmatpush.bf16.xpose.msrb.mxu0 %v843_v38  ;;  %v2672_v51 = vpack.c.b16 %v1028_v49, %v1028_v49 }
 0x121   : > { %v979_v39 = vunpack.c.l.b16 %v808_v36  ;;  %v985_v40 = vpack.c.b16 %v984_v37, %v984_v37  ;;  %v802_v43 = vpop.f32.mrf.mxu2 }
 0x122   : > { %v803_v44 = vadd.f32 %v1929_v42, %v802_v43 }
 0x123   : > { %1141 = vrot.lane.b32.xlu2 %v985_v40, %s2311_s26  ;;  %986 = vrot.lane.b32.xlu0 %v985_v40, %s2312_s9  ;;  %v980_v41 = vpack.c.b16 %v979_v39, %v979_v39 }
 0x124   : > { %v812_v46 = vpack.c.bf16 %v803_v44, %v803_v44 }
 0x125   : > { %981 = vrot.lane.b32.xlu1 %v980_v41, %s2312_s9 }
 0x126   : > { %v1052_v48 = vunpack.c.l.b16 %v812_v46  ;;  %v902_v3 = vsel %vm881_vm2, %v812_v46, 0 }
 0x127   : > { %1770 = vmatmul.msk.bf16.vlgmr.msrb.gmra.mxu0 %vm819_vm1, %v808_v36  ;;  %911 = vmatpush.bf16.msrb.mxu2 %v902_v3 }
 0x128   : > { %v2670_v50 = vpack.c.b16 %v1052_v48, %v1052_v48 }
 0x12b   : > { %1267 = vrot.lane.b32.xlu2 %v956_v27, %s2313_s28  ;;  %1116 = vrot.lane.b32.xlu0 %v951_v32, %s2311_s26 }
 0x12d   : > { %1139 = vrot.lane.b32.xlu1 %v980_v41, %s2311_s26 }
 0x133   : > { %1288 = vrot.lane.b32.xlu2 %v980_v41, %s2313_s28  ;;  %1290 = vrot.lane.b32.xlu0 %v985_v40, %s2313_s28 }
 0x135   : > { %1265 = vrot.lane.b32.xlu1 %v951_v32, %s2313_s28 }
 0x13b   : > { %1054 = vrot.lane.b32.xlu0 %v2670_v50, %s2312_s9  ;;  %1182 = vrot.lane.b32.xlu2 %v2672_v51, %s2311_s26 }
 0x175   : > { %v1119_v52 = vpop.permute.xlu2 %1118 }
 0x176   : > { %v1124_v56 = vsel %vm819_vm1, %v1119_v52, 0 }
 0x17d   : > { %v1142_v53 = vpop.permute.xlu2 %1141 }
 0x17e   : > { %v1147_v62 = vsel %vm819_vm1, %v1142_v53, 0 }
 0x185   : > { %v1268_v57 = vpop.permute.xlu2 %1267 }
 0x186   : > { %v1273_v60 = vsel %vm819_vm1, %v1268_v57, 0 }
 0x18d   : > { %v958_v54 = vpop.permute.xlu0 %957  ;;  %v1289_v21 = vpop.permute.xlu2 %1288 }
 0x18e   : > { %v963_v55 = vsel %vm819_vm1, %v958_v54, 0 }
 0x18f   : > { %972 = vmatpush.bf16.xpose.msrb.mxu3 %v963_v55  ;;  %v953_v58 = vpop.permute.xlu1 %952 }
 0x195   : > { %v987_v59 = vpop.permute.xlu0 %986  ;;  %v1183_v47 = vpop.permute.xlu2 %1182 }
 0x196   : > { %v992_v61 = vsel %vm819_vm1, %v987_v59, 0  ;;  %1773 = vmatmul.msk.bf16.vlgmr.msrb.gmra.mxu3 %vm819_vm1, %v953_v58  ;;  %v1188_v54 = vsel %vm881_vm2, %v1183_v47, 0 }
 0x197   : > { %1133 = vmatpush.bf16.xpose.msra.mxu3 %v1124_v56  ;;  %1001 = vmatpush.bf16.xpose.msra.mxu0 %v992_v61  ;;  %v982_v63 = vpop.permute.xlu1 %981 }
 0x19d   : > { %v1117_v0 = vpop.permute.xlu0 %1116 }
 0x19e   : > { %1774 = vmatmul.msk.bf16.vlgmr.msra.gmra.mxu0 %vm819_vm1, %v982_v63 }
 0x19f   : > { %1282 = vmatpush.bf16.xpose.msrb.mxu3 %v1273_v60  ;;  %1156 = vmatpush.bf16.xpose.msrb.mxu0 %v1147_v62  ;;  %v1140_v16 = vpop.permute.xlu1 %1139 }
 0x1a2   : > { %v835_v7 = vpop.f32.mrf.mxu3 }
 0x1a3   : > { %v836_v8 = vadd.f32 %v2686_v1, %v835_v7 }
 0x1a4   : > { %v854_v9 = vpop.f32.mrf.mxu0 }
 0x1a5   : > { %v855_v10 = vadd.f32 %v2691_v6, %v854_v9  ;;  %v1291_v11 = vpop.permute.xlu0 %1290  ;;  %v858_v12 = vsel %vm819_vm1, %v836_v8, -inf }
 0x1a6   : > { %v1296_v13 = vsel %vm819_vm1, %v1291_v11, 0  ;;  %1777 = vmatmul.msk.bf16.vlgmr.msra.gmra.mxu3 %vm819_vm1, %v1117_v0  ;;  %859 = vmax.xlane.f32.xlu1 %v858_v12 }
 0x1a7   : > { %1305 = vmatpush.bf16.xpose.msra.mxu0 %v1296_v13  ;;  %v861_v14 = vsel %vm819_vm1, %v855_v10, -inf  ;;  %v1266_v20 = vpop.permute.xlu1 %1265 }
 0x1a8   : > { %862 = vmax.xlane.f32.xlu0 %v861_v14 }
 0x1aa   : > { %v837_v15 = vpop.f32.mrf.mxu3 }
 0x1ac   : > { %v856_v17 = vpop.f32.mrf.mxu0 }
 0x1ad   : > { %v1055_v18 = vpop.permute.xlu0 %1054 }
 0x1ae   : > { %1778 = vmatmul.msk.bf16.vlgmr.msrb.gmra.mxu0 %vm819_vm1, %v1140_v16  ;;  %v1060_v19 = vsel %vm881_vm2, %v1055_v18, 0 }
 0x1af   : > { %1069 = vmatpush.bf16.msra.mxu2 %v1060_v19 }
 0x1b6   : > { %1781 = vmatmul.msk.bf16.vlgmr.msrb.gmra.mxu3 %vm819_vm1, %v1266_v20 }
 0x1bc   : > { %1203 = vrot.lane.b32.xlu0 %v2670_v50, %s2311_s26 }
 0x1be   : > { %1782 = vmatmul.msk.bf16.vlgmr.msra.gmra.mxu0 %vm819_vm1, %v1289_v21 }
 0x1bf   : > { %1030 = vrot.lane.b32.xlu1 %v2672_v51, %s2312_s9 }
 0x219   : > { %v974_v22 = vpop.f32.mrf.mxu3  ;;  %v860_v23 = vpop.xlane.xlu1 %859 }
 0x21a   : > { %v975_v24 = vadd.f32 %v2686_v1, %v974_v22  ;;  %v864_v25 = vsub.f32 %v836_v8, %v860_v23 }
 0x21b   : > { %v863_v26 = vpop.xlane.xlu0 %862  ;;  %v1003_v27 = vpop.f32.mrf.mxu0 }
 0x21c   : > { %v866_v28 = vmul.f32 1.442695, %v864_v25  ;;  %v865_v29 = vsub.f32 %v855_v10, %v863_v26  ;;  %v1007_v30 = vsel %vm819_vm1, %v975_v24, -inf  ;;  %v1004_v32 = vadd.f32 %v2691_v6, %v1003_v27 }
 0x21d   : > { %1008 = vmax.xlane.f32.xlu2 %v1007_v30 }
 0x21e   : > { %1935 = vpow2.f32 %v866_v28  ;;  %v868_v31 = vmul.f32 1.442695, %v865_v29  ;;  %v1010_v36 = vsel %vm819_vm1, %v1004_v32, -inf }
 0x220   : > { %1937 = vpow2.f32 %v868_v31 }
 0x221   : > { %v976_v33 = vpop.f32.mrf.mxu3 }
 0x223   : > { %v1005_v34 = vpop.f32.mrf.mxu0 }
 0x224   : > { %v2710_v35 = vpop.eup %1935 }
 0x225   : > { %1011 = vmax.xlane.f32.xlu2 %v1010_v36  ;;  %v876_v37 = vpack.c.bf16 %v2710_v35, %v2710_v35 }
 0x226   : > { %v2715_v38 = vpop.eup %1937 }
 0x227   : > { %1771 = vmatmul.msk.bf16.vlgmr.msrb.gmra.mxu1 %vm819_vm1, %v876_v37  ;;  %v877_v39 = vpack.c.bf16 %v2715_v38, %v2715_v38  ;;  %v873_v47 = vsel %vm819_vm1, %v2715_v38, 0.0 }
 0x229   : > { %1772 = vmatmul.msk.bf16.vlgmr.msrb.gmra.mxu2 %vm819_vm1, %v877_v39  ;;  %v1135_v40 = vpop.f32.mrf.mxu3 }
 0x22a   : > { %v1136_v41 = vadd.f32 %v2686_v1, %v1135_v40 }
 0x22b   : > { %v1158_v42 = vpop.f32.mrf.mxu0 }
 0x22c   : > { %v1162_v43 = vsel %vm819_vm1, %v1136_v41, -inf  ;;  %v1159_v46 = vadd.f32 %v2691_v6, %v1158_v42 }
 0x22d   : > { %1163 = vmax.xlane.f32.xlu2 %v1162_v43 }
 0x22e   : > { %v1204_v44 = vpop.permute.xlu0 %1203  ;;  %v1165_v55 = vsel %vm819_vm1, %v1159_v46, -inf }
 0x22f   : > { %v1209_v45 = vsel %vm881_vm2, %v1204_v44, 0 }
 0x230   : > { %1218 = vmatpush.bf16.msrb.mxu2 %v1209_v45 }
 0x231   : > { %v1137_v48 = vpop.f32.mrf.mxu3  ;;  %v1031_v49 = vpop.permute.xlu1 %1030 }
 0x232   : > { %v1036_v52 = vsel %vm881_vm2, %v1031_v49, 0 }
 0x233   : > { %v1160_v53 = vpop.f32.mrf.mxu0  ;;  %1045 = vmatpush.bf16.msra.mxu1 %v1036_v52 }
 0x235   : > { %1166 = vmax.xlane.f32.xlu2 %v1165_v55 }
 0x237   : > { %1197 = vmatpush.bf16.msrb.mxu1 %v1188_v54 }
 0x239   : > { %v1284_v56 = vpop.f32.mrf.mxu3 }
 0x23a   : > { %v1285_v57 = vadd.f32 %v2686_v1, %v1284_v56 }
 0x23b   : > { %v1307_v58 = vpop.f32.mrf.mxu0 }
 0x23c   : > { %v1308_v59 = vadd.f32 %v2691_v6, %v1307_v58  ;;  %v1311_v60 = vsel %vm819_vm1, %v1285_v57, -inf }
 0x23d   : > { %1312 = vmax.xlane.f32.xlu0 %v1311_v60 }
 0x23e   : > { %v1314_v61 = vsel %vm819_vm1, %v1308_v59, -inf }
 0x23f   : > { %1315 = vmax.xlane.f32.xlu1 %v1314_v61 }
 0x241   : > { %v1286_v62 = vpop.f32.mrf.mxu3 }
 0x243   : > { %v1309_v63 = vpop.f32.mrf.mxu0 }
 0x24d   : > { %1352 = vrot.lane.b32.xlu2 %v2670_v50, %s2313_s28 }
 0x255   : > { %1331 = vrot.lane.b32.xlu2 %v2672_v51, %s2313_s28  ;;  %s1534_s28 = sshll.u32 %s675_s23, 4  ;;  %s1535_s28 = int_to_ptr.vmem [resolvable:$true] %s1534_s28 }
 0x290   : > { %v1009_v0 = vpop.xlane.xlu2 %1008 }
 0x291   : > { %v1013_v2 = vsub.f32 %v975_v24, %v1009_v0 }
 0x293   : > { %v1015_v1 = vmul.f32 1.442695, %v1013_v2 }
 0x295   : > { %1939 = vpow2.f32 %v1015_v1 }
 0x298   : > { %v1012_v3 = vpop.xlane.xlu2 %1011 }
 0x299   : > { %v1014_v6 = vsub.f32 %v1004_v32, %v1012_v3 }
 0x29b   : > { %v1940_v7 = vpop.eup %1939  ;;  %v1017_v8 = vmul.f32 1.442695, %v1014_v6 }
 0x29c   : > { %v1025_v9 = vpack.c.bf16 %v1940_v7, %v1940_v7  ;;  %v1019_v10 = vsel %vm819_vm1, %v1940_v7, 0.0 }
 0x29d   : > { %1941 = vpow2.f32 %v1017_v8  ;;  %1020 = vadd.xlane.f32.xlu2 %v1019_v10 }
 0x29e   : > { %1775 = vmatmul.msk.bf16.vlgmr.msra.gmra.mxu1 %vm819_vm1, %v1025_v9 }
 0x2a0   : > { %v1164_v11 = vpop.xlane.xlu2 %1163 }
 0x2a1   : > { %v1168_v50 = vsub.f32 %v1136_v41, %v1164_v11 }
 0x2a3   : > { %v1942_v12 = vpop.eup %1941  ;;  %v1170_v13 = vmul.f32 1.442695, %v1168_v50 }
 0x2a4   : > { %v1026_v51 = vpack.c.bf16 %v1942_v12, %v1942_v12  ;;  %v2738_v14 = vpop.f32.mrf.mxu1  ;;  %v1022_v15 = vsel %vm819_vm1, %v1942_v12, 0.0 }
 0x2a5   : > { %1943 = vpow2.f32 %v1170_v13  ;;  %1023 = vadd.xlane.f32.xlu1 %v1022_v15 }
 0x2a6   : > { %1776 = vmatmul.msk.bf16.vlgmr.msra.gmra.mxu2 %vm819_vm1, %v1026_v51 }
 0x2a8   : > { %v1167_v16 = vpop.xlane.xlu2 %1166 }
 0x2a9   : > { %v1169_v17 = vsub.f32 %v1159_v46, %v1167_v16  ;;  %v870_v46 = vsel %vm819_vm1, %v2710_v35, 0.0 }
 0x2ab   : > { %v1944_v18 = vpop.eup %1943  ;;  %v1172_v19 = vmul.f32 1.442695, %v1169_v17 }
 0x2ac   : > { %v1180_v20 = vpack.c.bf16 %v1944_v18, %v1944_v18  ;;  %v896_v21 = vpop.f32.mrf.mxu1  ;;  %v2742_v22 = vpop.f32.mrf.mxu2  ;;  %v1174_v23 = vsel %vm819_vm1, %v1944_v18, 0.0 }
 0x2ad   : > { %1945 = vpow2.f32 %v1172_v19  ;;  %1175 = vadd.xlane.f32.xlu0 %v1174_v23 }
 0x2ae   : > { %1779 = vmatmul.msk.bf16.vlgmr.msrb.gmra.mxu1 %vm819_vm1, %v1180_v20 }
 0x2b0   : > { %v1313_v24 = vpop.xlane.xlu0 %1312  ;;  %v1353_v25 = vpop.permute.xlu2 %1352 }
 0x2b1   : > { %v1317_v26 = vsub.f32 %v1285_v57, %v1313_v24  ;;  %v1358_v27 = vsel %vm881_vm2, %v1353_v25, 0 }
 0x2b2   : > { %1367 = vmatpush.bf16.msra.mxu2 %v1358_v27  ;;  %v1316_v28 = vpop.xlane.xlu1 %1315 }
 0x2b3   : > { %v1946_v29 = vpop.eup %1945  ;;  %v1319_v30 = vmul.f32 1.442695, %v1317_v26  ;;  %v1318_v31 = vsub.f32 %v1308_v59, %v1316_v28 }
 0x2b4   : > { %v1181_v32 = vpack.c.bf16 %v1946_v29, %v1946_v29  ;;  %v915_v33 = vpop.f32.mrf.mxu2  ;;  %v1177_v34 = vsel %vm819_vm1, %v1946_v29, 0.0 }
 0x2b5   : > { %1947 = vpow2.f32 %v1319_v30  ;;  %v1321_v36 = vmul.f32 1.442695, %v1318_v31  ;;  %1178 = vadd.xlane.f32.xlu1 %v1177_v34 }
 0x2b6   : > { %1780 = vmatmul.msk.bf16.vlgmr.msrb.gmra.mxu2 %vm819_vm1, %v1181_v32 }
 0x2b7   : > { %1949 = vpow2.f32 %v1321_v36 }
 0x2b8   : > { %v1332_v37 = vpop.permute.xlu2 %1331 }
 0x2b9   : > { %v1337_v39 = vsel %vm881_vm2, %v1332_v37, 0 }
 0x2ba   : > { %1346 = vmatpush.bf16.msra.mxu1 %v1337_v39 }
 0x2bb   : > { %v1948_v40 = vpop.eup %1947 }
 0x2bc   : > { %v1329_v41 = vpack.c.bf16 %v1948_v40, %v1948_v40  ;;  %v1323_v42 = vsel %vm819_vm1, %v1948_v40, 0.0 }
 0x2bd   : > { %v1950_v43 = vpop.eup %1949  ;;  %1324 = vadd.xlane.f32.xlu0 %v1323_v42 }
 0x2be   : > { %1783 = vmatmul.msk.bf16.vlgmr.msra.gmra.mxu1 %vm819_vm1, %v1329_v41  ;;  %v1326_v44 = vsel %vm819_vm1, %v1950_v43, 0.0  ;;  %v1330_v45 = vpack.c.bf16 %v1950_v43, %v1950_v43 }
 0x2bf   : > { %1327 = vadd.xlane.f32.xlu1 %v1326_v44 }
 0x2c5   : > { %871 = vadd.xlane.f32.xlu0 %v870_v46 }
 0x2c6   : > { %1784 = vmatmul.msk.bf16.vlgmr.msra.gmra.mxu2 %vm819_vm1, %v1330_v45 }
 0x2c7   : > { %874 = vadd.xlane.f32.xlu1 %v873_v47 }
 0x310   : > { %v1021_v48 = vpop.xlane.xlu2 %1020 }
 0x311   : > { %1951 = vrcp.f32 %v1021_v48  ;;  %v1086_v56 = vand.u32 2147483648, %v1021_v48  ;;  %v1084_v58 = vand.u32 2147483647, %v1021_v48  ;;  %vm1080_vm4 = vweird.f32 %v1021_v48 }
 0x313   : > { %v1087_v60 = vor.u32 1.1754944e-38, %v1086_v56  ;;  %vm1085_vm6 = vcmp.eq.f32.partialorder %v1084_v58, 8.507059e+37 }
 0x317   : > { %v1952_v49 = vpop.eup %1951 }
 0x318   : > { %v1076_v52 = vmul.f32 %v1952_v49, %v1021_v48  ;;  %v1024_v53 = vpop.xlane.xlu1 %1023  ;;  %vm1081_vm3 = vweird.f32 %v1952_v49 }
 0x319   : > { %1953 = vrcp.f32 %v1024_v53  ;;  %vm1082_vm5 = vmor %vm1080_vm4, %vm1081_vm3  ;;  %v1100_v3 = vand.u32 2147483648, %v1024_v53  ;;  %v1098_v7 = vand.u32 2147483647, %v1024_v53  ;;  %vm1094_vm8 = vweird.f32 %v1024_v53 }
 0x31a   : > { %v1077_v54 = vsub.f32 1.0, %v1076_v52 }
 0x31b   : > { %v1047_v55 = vpop.f32.mrf.mxu1  ;;  %v1101_v10 = vor.u32 1.1754944e-38, %v1100_v3  ;;  %vm1099_vm10 = vcmp.eq.f32.partialorder %v1098_v7, 8.507059e+37 }
 0x31c   : > { %v1078_v57 = vmul.f32 %v1952_v49, %v1077_v54 }
 0x31e   : > { %v1079_v35 = vadd.f32 %v1952_v49, %v1078_v57 }
 0x31f   : > { %v1954_v59 = vpop.eup %1953 }
 0x320   : > { %v1090_v61 = vmul.f32 %v1954_v59, %v1024_v53  ;;  %v1083_v38 = vsel %vm1082_vm5, %v1952_v49, %v1079_v35  ;;  %v1176_v62 = vpop.xlane.xlu0 %1175  ;;  %vm1095_vm7 = vweird.f32 %v1954_v59 }
 0x321   : > { %v1088_v63 = vsel %vm1085_vm6, %v1087_v60, %v1083_v38  ;;  %1955 = vrcp.f32 %v1176_v62  ;;  %vm1096_vm9 = vmor %vm1094_vm8, %vm1095_vm7  ;;  %v1235_v18 = vand.u32 2147483648, %v1176_v62  ;;  %v1233_v20 = vand.u32 2147483647, %v1176_v62 }
 0x322   : > { %v1091_v0 = vsub.f32 1.0, %v1090_v61  ;;  %v1103_v2 = vmul.f32 %v1088_v63, %v1047_v55  ;;  %vm1229_vm12 = vweird.f32 %v1176_v62 }
 0x323   : > { %v1049_v1 = vpop.f32.mrf.mxu1  ;;  %v1236_v24 = vor.u32 1.1754944e-38, %v1235_v18  ;;  %vm1234_vm14 = vcmp.eq.f32.partialorder %v1233_v20, 8.507059e+37 }
 0x324   : > { %1107 = vrot.lane.b32.xlu0 %v1103_v2, %s2314_s22  ;;  %v1092_v6 = vmul.f32 %v1954_v59, %v1091_v0 }
 0x326   : > { %v1093_v8 = vadd.f32 %v1954_v59, %v1092_v6 }
 0x327   : > { %v1956_v9 = vpop.eup %1955 }
 0x328   : > { %v1225_v11 = vmul.f32 %v1956_v9, %v1176_v62  ;;  %v1179_v50 = vpop.xlane.xlu1 %1178  ;;  %v1097_v12 = vsel %vm1096_vm9, %v1954_v59, %v1093_v8  ;;  %vm1230_vm11 = vweird.f32 %v1956_v9 }
 0x329   : > { %1957 = vrcp.f32 %v1179_v50  ;;  %v1071_v13 = vpop.f32.mrf.mxu2  ;;  %v1102_v51 = vsel %vm1099_vm10, %v1101_v10, %v1097_v12  ;;  %vm1231_vm13 = vmor %vm1229_vm12, %vm1230_vm11  ;;  %v1249_v36 = vand.u32 2147483648, %v1179_v50  ;;  %v1247_v37 = vand.u32 2147483647, %v1179_v50 }
 0x32a   : > { %v1226_v15 = vsub.f32 1.0, %v1225_v11  ;;  %v1104_v16 = vmul.f32 %v1102_v51, %v1071_v13  ;;  %vm1243_vm2 = vweird.f32 %v1179_v50 }
 0x32b   : > { %v1199_v17 = vpop.f32.mrf.mxu1  ;;  %v1250_v44 = vor.u32 1.1754944e-38, %v1249_v36  ;;  %vm1248_vm4 = vcmp.eq.f32.partialorder %v1247_v37, 8.507059e+37 }
 0x32c   : > { %v1227_v19 = vmul.f32 %v1956_v9, %v1226_v15  ;;  %1109 = vrot.lane.b32.xlu1 %v1104_v16, %s2314_s22 }
 0x32e   : > { %v1228_v21 = vadd.f32 %v1956_v9, %v1227_v19 }
 0x32f   : > { %v1958_v23 = vpop.eup %1957 }
 0x330   : > { %v1239_v25 = vmul.f32 %v1958_v23, %v1179_v50  ;;  %v1232_v26 = vsel %vm1231_vm13, %v1956_v9, %v1228_v21  ;;  %v1325_v27 = vpop.xlane.xlu0 %1324  ;;  %vm1244_vm15 = vweird.f32 %v1958_v23 }
 0x331   : > { %v1237_v28 = vsel %vm1234_vm14, %v1236_v24, %v1232_v26  ;;  %1959 = vrcp.f32 %v1325_v27  ;;  %v1073_v29 = vpop.f32.mrf.mxu2  ;;  %vm1245_vm3 = vmor %vm1243_vm2, %vm1244_vm15  ;;  %v1384_v56 = vand.u32 2147483648, %v1325_v27  ;;  %v1382_v58 = vand.u32 2147483647, %v1325_v27 }
 0x332   : > { %v1240_v30 = vsub.f32 1.0, %v1239_v25  ;;  %v1252_v31 = vmul.f32 %v1237_v28, %v1199_v17  ;;  %v2760_v32 = vpop.xlane.xlu1 %1327  ;;  %vm1378_vm6 = vweird.f32 %v1325_v27 }
 0x333   : > { %1961 = vrcp.f32 %v2760_v32  ;;  %v1201_v33 = vpop.f32.mrf.mxu1  ;;  %v1385_v38 = vor.u32 1.1754944e-38, %v1384_v56  ;;  %vm1383_vm8 = vcmp.eq.f32.partialorder %v1382_v58, 8.507059e+37  ;;  %vm1392_vm9 = vweird.f32 %v2760_v32 }
 0x334   : > { %1256 = vrot.lane.b32.xlu2 %v1252_v31, %s2315_s15  ;;  %v1241_v34 = vmul.f32 %v1958_v23, %v1240_v30  ;;  %v1396_v10 = vand.u32 2147483647, %v2760_v32  ;;  %v1398_v11 = vand.u32 2147483648, %v2760_v32 }
 0x336   : > { %v1242_v39 = vadd.f32 %v1958_v23, %v1241_v34  ;;  %vm1397_vm2 = vcmp.eq.f32.partialorder %v1396_v10, 8.507059e+37  ;;  %v1399_v21 = vor.u32 1.1754944e-38, %v1398_v11 }
 0x337   : > { %v1960_v40 = vpop.eup %1959 }
 0x338   : > { %v1374_v41 = vmul.f32 %v1960_v40, %v1325_v27  ;;  %v872_v42 = vpop.xlane.xlu0 %871  ;;  %v1246_v43 = vsel %vm1245_vm3, %v1958_v23, %v1242_v39  ;;  %vm1379_vm5 = vweird.f32 %v1960_v40 }
 0x339   : > { %v2763_v45 = vpop.eup %1961  ;;  %1963 = vrcp.f32 %v872_v42  ;;  %v1220_v46 = vpop.f32.mrf.mxu2  ;;  %v1251_v49 = vsel %vm1248_vm4, %v1250_v44, %v1246_v43  ;;  %vm1380_vm7 = vmor %vm1378_vm6, %vm1379_vm5  ;;  %v928_v7 = vand.u32 2147483648, %v872_v42  ;;  %v926_v12 = vand.u32 2147483647, %v872_v42 }
 0x33a   : > { %v1375_v47 = vsub.f32 1.0, %v1374_v41  ;;  %v1388_v48 = vmul.f32 %v2763_v45, %v2760_v32  ;;  %v875_v52 = vpop.xlane.xlu1 %874  ;;  %v1253_v53 = vmul.f32 %v1251_v49, %v1220_v46  ;;  %vm1393_vm10 = vweird.f32 %v2763_v45  ;;  %v1932_v46 = vld [vmem:[%s2913_s27] ss:$0 sm:$0xff]  ;;  %s2233_s27 = scalar_lea.hbm %s2916_s10, 32 }
 0x33b   : > { %1965 = vrcp.f32 %v875_v52  ;;  %v1348_v54 = vpop.f32.mrf.mxu1  ;;  %vm922_vm12 = vweird.f32 %v872_v42  ;;  %v940_v51 = vand.u32 2147483647, %v875_v52  ;;  %v942_v15 = vand.u32 2147483648, %v875_v52  ;;  %vm2777_vm13 = vmor %vm1392_vm9, %vm1393_vm10 }
 0x33c   : > { %v1389_v55 = vsub.f32 1.0, %v1388_v48  ;;  %v1376_v57 = vmul.f32 %v1960_v40, %v1375_v47  ;;  %1258 = vrot.lane.b32.xlu0 %v1253_v53, %s2315_s15  ;;  %v929_v20 = vor.u32 1.1754944e-38, %v928_v7  ;;  %vm927_vm3 = vcmp.eq.f32.partialorder %v926_v12, 8.507059e+37  ;;  %s1536_s15 = sshll.u32 %s1533_s13, 4  ;;  %s1537_s15 = int_to_ptr.hbm [resolvable:$true] %s1536_s15 }
 0x33d   : > { %vm936_vm4 = vweird.f32 %v875_v52  ;;  %v943_v26 = vor.u32 1.1754944e-38, %v942_v15  ;;  %vm941_vm6 = vcmp.eq.f32.partialorder %v940_v51, 8.507059e+37  ;;  %vm1411_vm9 = vcmask 261312  }
 0x33e   : > { %v1390_v35 = vmul.f32 %v2763_v45, %v1389_v55  ;;  %v1377_v60 = vadd.f32 %v1960_v40, %v1376_v57  ;;  %v2317_v57 = vmov 32.0  }
 0x33f   : > { %v1964_v59 = vpop.eup %1963  ;;  %1967 = vrcp.f32 %v2317_v57 }
 0x340   : > { %v918_v61 = vmul.f32 %v1964_v59, %v872_v42  ;;  %v1381_v63 = vsel %vm1380_vm7, %v1960_v40, %v1377_v60  ;;  %v1391_v6 = vadd.f32 %v2763_v45, %v1390_v35  ;;  %vm923_vm11 = vweird.f32 %v1964_v59  ;;  %v1809_v40 = vld [vmem:[#allocation15 + $0x8] sm:$0xff] }
 0x341   : > { %v1966_v62 = vpop.eup %1965  ;;  %v1222_v0 = vpop.f32.mrf.mxu2  ;;  %v1386_v3 = vsel %vm1383_vm8, %v1385_v38, %v1381_v63  ;;  %vm924_vm15 = vmor %vm922_vm12, %vm923_vm11  ;;  %vm1113_vm7 = vcmask 130112   ;;  %vm1262_vm8 = vcmask 195712   ;;  %1446 = vmatpush.bf16.msra.mxu3 %v1809_v40 }
 0x342   : > { %v919_v2 = vsub.f32 1.0, %v918_v61  ;;  %v932_v1 = vmul.f32 %v1966_v62, %v875_v52  ;;  %v1401_v8 = vmul.f32 %v1386_v3, %v1348_v54  ;;  %vm937_vm14 = vweird.f32 %v1966_v62 }
 0x343   : > { %v1350_v9 = vpop.f32.mrf.mxu1  ;;  %v1395_v19 = vsel %vm2777_vm13, %v2763_v45, %v1391_v6  ;;  %vm938_vm5 = vmor %vm936_vm4, %vm937_vm14 }
 0x344   : > { %v920_v50 = vmul.f32 %v1964_v59, %v919_v2  ;;  %v933_v13 = vsub.f32 1.0, %v932_v1  ;;  %1405 = vrot.lane.b32.xlu0 %v1401_v8, %s2316_s24  ;;  %v1400_v28 = vsel %vm1397_vm2, %v1399_v21, %v1395_v19  ;;  %v1933_v21 = vld [vmem:[%s2914_s12] ss:$0 sm:$0xff] }
 0x345   : > { %v1968_v58 = vpop.eup %1967 }
 0x346   : > { %v921_v17 = vadd.f32 %v1964_v59, %v920_v50  ;;  %v934_v18 = vmul.f32 %v1966_v62, %v933_v13  ;;  %v1463_v35 = vmul.f32 32.0, %v1968_v58 }
 0x348   : > { %v925_v23 = vsel %vm924_vm15, %v1964_v59, %v921_v17  ;;  %v935_v24 = vadd.f32 %v1966_v62, %v934_v18  ;;  %v1464_v59 = vsub.f32 1.0, %v1463_v35 }
 0x349   : > { %v930_v25 = vsel %vm927_vm3, %v929_v20, %v925_v23  ;;  %v1369_v27 = vpop.f32.mrf.mxu2 }
 0x34a   : > { %v939_v29 = vsel %vm938_vm5, %v1966_v62, %v935_v24  ;;  %v1402_v30 = vmul.f32 %v1400_v28, %v1369_v27  ;;  %v945_v31 = vmul.f32 %v930_v25, %v2738_v14  ;;  %v1808_v14 = vld [vmem:[#allocation15] sm:$0xff]  ;;  %v1465_v60 = vmul.f32 %v1968_v58, %v1464_v59  ;;  %v1934_v25 = vld [vmem:[%s2915_s11] ss:$0 sm:$0xff] }
 0x34b   : > { %v944_v32 = vsel %vm941_vm6, %v943_v26, %v939_v29  ;;  %1447 = vmatpush.bf16.msra.mxu3 %v1808_v14 }
 0x34c   : > { %1407 = vrot.lane.b32.xlu1 %v1402_v30, %s2316_s24  ;;  %947 = vst.msk [vmem:[#allocation2] sm:$0xff] %vm819_vm1, %v945_v31  ;;  %v946_v33 = vmul.f32 %v944_v32, %v2742_v22  ;;  %v1466_v61 = vadd.f32 %v1968_v58, %v1465_v60  ;;  %s2227_s24 = sshra.s32 %s1537_s15, 4  ;;  %s2228_s24 = int_to_ptr.hbm [resolvable:$true] %s2227_s24 }
 0x34d   : > { %s2229_s21 = scalar_lea.hbm %s2228_s24, 16  ;;  %p2234_p2 = scmp.lt.s32.totalorder %s2228_s24, %s2916_s10 }
 0x34e   : > { %948 = vst.msk [vmem:[#allocation2 + $0x8] sm:$0xff] %vm819_vm1, %v946_v33  ;;  %vm1467_vm1 = vweird.f32 %v1968_v58  ;;  %p2230_p4 = scmp.ne.s32.totalorder %s2228_s24, %s2229_s21  ;;  %p2235_p10 = scmp.lt.s32.totalorder %s2233_s27, %s2229_s21 }
 0x34f   : > { %v1468_v38 = vsel %vm1467_vm1, %v1968_v58, %v1466_v61 }
 0x350   : > { %p2231_p1 = pnand %p2230_p4, %p2474_p3  ;;  %p2236_p13 = por %p2235_p10, %p2234_p2 }
 0x351   : > { %v1371_v34 = vpop.f32.mrf.mxu2 }
 0x352   : > { %p2232_p11 = pneg %p2231_p1 }
 0x354   : > { %p2237_p8 = pnand %p2236_p13, %p2232_p11 }
 0x38e   : > { %v1257_v37 = vpop.permute.xlu2 %1256 }
 0x396   : > { %v1108_v36 = vpop.permute.xlu0 %1107 }
 0x397   : > { %1114 = vst.msk [vmem:[#allocation2] sm:$0xff] %vm1113_vm7, %v1108_v36 }
 0x398   : > { %1263 = vst.msk [vmem:[#allocation2] sm:$0xff] %vm1262_vm8, %v1257_v37 }
 0x39e   : > { %v1110_v39 = vpop.permute.xlu1 %1109 }
 0x39f   : > { %1115 = vst.msk [vmem:[#allocation2 + $0x8] sm:$0xff] %vm1113_vm7, %v1110_v39 }
 0x3ae   : > { %v1259_v41 = vpop.permute.xlu0 %1258 }
 0x3af   : > { %1264 = vst.msk [vmem:[#allocation2 + $0x8] sm:$0xff] %vm1262_vm8, %v1259_v41 }
 0x3b6   : > { %v1406_v42 = vpop.permute.xlu0 %1405 }
 0x3b7   : > { %1412 = vst.msk [vmem:[#allocation2] sm:$0xff] %vm1411_vm9, %v1406_v42 }
 0x3be   : > { %v1408_v22 = vpop.permute.xlu1 %1407  ;;  %v1414_v43 = vld [vmem:[#allocation2] sm:$0xff] }
 0x3bf   : > { %1413 = vst.msk [vmem:[#allocation2 + $0x8] sm:$0xff] %vm1411_vm9, %v1408_v22 }
 0x3c6   : > { %v1415_v44 = vld [vmem:[#allocation2 + $0x8] sm:$0xff] }
 0x3c7   : > { %v1416_v45 = vpack.c.bf16 %v1415_v44, %v1414_v43 }
 0x3c9   : > { %1793 = vmatmul.msk.bf16.vlgmr.msra.gmra.mxu3 %vm709_vm0, %v1416_v45 }
 0x44c   : > { %v1449_v47 = vpop.f32.mrf.mxu3 }
 0x44d   : > { %v1450_v48 = vadd.f32 %v1932_v46, %v1449_v47 }
 0x44f   : > { %v1454_v49 = vadd.f32 %v1450_v48, %v2636_v4 }
 0x451   : > { %v1456_v52 = vsel %vm709_vm0, %v1454_v49, 0.0 }
 0x452   : > { %1457 = vadd.xlane.f32.xlu2 %v1456_v52 }
 0x454   : > { %v1451_v53 = vpop.f32.mrf.mxu3 }
 0x455   : > { %v1452_v54 = vadd.f32 %v1932_v46, %v1451_v53 }
 0x457   : > { %v1455_v55 = vadd.f32 %v1452_v54, %v2638_v5 }
 0x459   : > { %v1459_v56 = vsel %vm709_vm0, %v1455_v55, 0.0 }
 0x45a   : > { %1460 = vadd.xlane.f32.xlu0 %v1459_v56 }
 0x4c5   : > { %v1458_v4 = vpop.xlane.xlu2 %1457 }
 0x4c6   : > { %v1469_v62 = vmul.f32 %v1468_v38, %v1458_v4 }
 0x4c8   : > { %v1471_v63 = vsub.f32 %v1454_v49, %v1469_v62 }
 0x4ca   : > { %v1473_v0 = vmul.f32 %v1471_v63, %v1471_v63 }
 0x4cc   : > { %v1475_v2 = vsel %vm709_vm0, %v1473_v0, 0.0 }
 0x4cd   : > { %v1461_v1 = vpop.xlane.xlu0 %1460  ;;  %1476 = vadd.xlane.f32.xlu1 %v1475_v2 }
 0x4ce   : > { %v1470_v5 = vmul.f32 %v1468_v38, %v1461_v1 }
 0x4d0   : > { %v1472_v3 = vsub.f32 %v1455_v55, %v1470_v5 }
 0x4d2   : > { %v1474_v6 = vmul.f32 %v1472_v3, %v1472_v3 }
 0x4d4   : > { %v1478_v7 = vsel %vm709_vm0, %v1474_v6, 0.0 }
 0x4d5   : > { %1479 = vadd.xlane.f32.xlu2 %v1478_v7 }
 0x540   : > { %v1477_v8 = vpop.xlane.xlu1 %1476 }
 0x541   : > { %v1481_v9 = vmul.f32 %v1477_v8, %v1468_v38 }
 0x543   : > { %v1483_v10 = vadd.f32 1e-05, %v1481_v9 }
 0x545   : > { %1969 = vrsqrt.f32 %v1483_v10  ;;  %vm1491_vm11 = vweird.f32 %v1483_v10 }
 0x548   : > { %v1480_v11 = vpop.xlane.xlu2 %1479 }
 0x549   : > { %v1482_v50 = vmul.f32 %v1480_v11, %v1468_v38 }
 0x54b   : > { %v1970_v12 = vpop.eup %1969  ;;  %v1484_v13 = vadd.f32 1e-05, %v1482_v50 }
 0x54c   : > { %v1486_v51 = vmul.f32 %v1970_v12, %v1483_v10  ;;  %vm1492_vm10 = vweird.f32 %v1970_v12 }
 0x54d   : > { %1971 = vrsqrt.f32 %v1484_v13  ;;  %vm1493_vm12 = vmor %vm1491_vm11, %vm1492_vm10  ;;  %vm1501_vm14 = vweird.f32 %v1484_v13 }
 0x54e   : > { %v1487_v15 = vmul.f32 %v1970_v12, %v1486_v51 }
 0x550   : > { %v1488_v16 = vmul.f32 0.5, %v1487_v15 }
 0x552   : > { %v1489_v17 = vsub.f32 1.5, %v1488_v16 }
 0x553   : > { %v1972_v18 = vpop.eup %1971 }
 0x554   : > { %v1490_v19 = vmul.f32 %v1970_v12, %v1489_v17  ;;  %v1496_v20 = vmul.f32 %v1972_v18, %v1484_v13  ;;  %vm1502_vm13 = vweird.f32 %v1972_v18 }
 0x555   : > { %vm1503_vm15 = vmor %vm1501_vm14, %vm1502_vm13 }
 0x556   : > { %v1494_v23 = vsel %vm1493_vm12, %v1970_v12, %v1490_v19  ;;  %v1497_v24 = vmul.f32 %v1972_v18, %v1496_v20 }
 0x557   : > { %v1505_v26 = vmul.f32 %v1494_v23, %v1471_v63 }
 0x558   : > { %v1498_v27 = vmul.f32 0.5, %v1497_v24 }
 0x559   : > { %v1511_v28 = vmul.f32 %v1933_v21, %v1505_v26 }
 0x55a   : > { %v1499_v29 = vsub.f32 1.5, %v1498_v27 }
 0x55b   : > { %v1517_v30 = vadd.f32 %v1934_v25, %v1511_v28 }
 0x55c   : > { %v1500_v31 = vmul.f32 %v1972_v18, %v1499_v29 }
 0x55d   : > { %1519 = vst.msk [vmem:[%s675_s23] sm:$0xff] %vm709_vm0, %v1517_v30 }
 0x55e   : > { %v1504_v32 = vsel %vm1503_vm15, %v1972_v18, %v1500_v31 }
 0x55f   : > { %v1506_v33 = vmul.f32 %v1504_v32, %v1472_v3 }
 0x561   : > { %v1512_v34 = vmul.f32 %v1933_v21, %v1506_v33 }
 0x563   : > { %v1518_v36 = vadd.f32 %v1934_v25, %v1512_v34 }
 0x565   : > { %1520 = vst.msk [vmem:[%s675_s23 + $0x8] sm:$0xff] %vm709_vm0, %v1518_v36 }
 0x566   : > { %2240 = shalt.err (!%p2237_p8)
}
 0x567   : > { %s2318_s20 = smov 128  }
 0x568   : > { %1835 = dma.vmem_to_hbm [thread:$0]  (%p2474_p3), %s1535_s28, 256, %s1537_s15, %s1522_s17, %s2318_s20, %s2318_s20, %s2314_s22  }
 0x569 PF: > { %s2918_s12 = sld [smem:[#allocation25_spill]]  ;;  %p2920_p9 = scmp.ge.s32.totalorder %s2299_s16, 2 }
 0x56b   : > { %p1864_p12 = pnand %p2920_p9, %p2429_p6 }
 0x56d   : > { %p1865_p0 = pneg %p1864_p12 }
 0x56f   : > { %s1551_s1 = sand.u32 1, %s2918_s12  }
 0x570   : > { %s1552_s11 = scalar_lea.sflag [#allocation5], %s1551_s1 }
 0x571   : > { %2282 = dma.done.wait (%p1865_p0), %s1552_s11, 256  }
 0x572   : > { %2284 = vsyncadd (%p1865_p0), %s1552_s11, 4294967040  ;;  %s2921_s16 = sld [smem:[#allocation28_spill]]  ;;  %s2924_s29 = smov %s2291_s30 }
 0x573   : > { %s2922_s14 = sld [smem:[#allocation26_spill]] }
 0x574   : > { %s2923_s15 = sld [smem:[#allocation30_spill]] }
 0x578   : > { %p35_p5 = scmp.ge.s32.totalorder %s2921_s16, 4  }
 0x579   : > { %s2925_s30 = smov %s2922_s14 }
 0x57a   :  { %37 = sbr.rel (!%p35_p5) target bundleno = 21 (0x15), region = 174 }
 0x57f   :  { %1558 = vsyncpa [#allocation4], 1 }
 0x580   :  { %1560 = vsyncpa [#allocation4 + $0x1], 1 }
 0x581   :  { %1561 = vsyncpa [#allocation7], 1 }
 0x582   :  { %1563 = vsyncpa [#allocation7 + $0x1], 1 }
 0x583   :  { %1564 = vsyncpa [#allocation10], 1 }
 0x584   :  { %1566 = vsyncpa [#allocation10 + $0x1], 1 }
 0x585   :  { %1567 = vsyncpa [#allocation13], 1 }
 0x586   :  { %1568 = vsyncpa [#allocation16], 1 }
 0x587   :  { %1569 = vsyncpa [#allocation5], 1 }
 0x588   :  { %1571 = vsyncpa [#allocation5 + $0x1], 1 }

</bundles_post_ra>
